<compile_context>
chip_gen: v7x
topology: tpu7x:2x2x1
jax: 0.10.0
libtpu: 0.0.40
codegen_flags: <defaults>
</compile_context>

<pallas_src>
import functools
import math

import jax
import jax.numpy as jnp
from jax.experimental import pallas as pl
from jax.experimental.pallas import tpu as pltpu

# ----------------------------- model config ---------------------------------
HIDDEN_SIZE = 32
VOCAB_SIZE = 64
NUM_LAYERS = 2
NUM_HEADS = 4
MAX_SEQ_LEN = 16
HEAD_DIM = HIDDEN_SIZE // NUM_HEADS
LN_EPS = 1e-5
NEG_INF = -1e30          # bounded masking constant (never -inf + -inf -> NaN)
_GELU_C = math.sqrt(2.0 / math.pi)


# ----------------------------- in-kernel helpers ----------------------------
def _gelu_new(y):
    # GPT-2 "gelu_new" (tanh approximation), computed in f32.
    return 0.5 * y * (1.0 + jnp.tanh(_GELU_C * (y + 0.044715 * y * y * y)))


def _layer_norm(x, g, b, eps=LN_EPS):
    mu = jnp.mean(x, axis=-1, keepdims=True)
    var = jnp.mean(jnp.square(x - mu), axis=-1, keepdims=True)
    return (x - mu) * jax.lax.rsqrt(var + eps) * g + b


def _mxu_dot(a, b):
    # bf16 MXU operands, f32 accumulation.  astype is a no-op for operands
    # that are already bf16 (the pre-cast weights).
    return jnp.dot(a.astype(jnp.bfloat16), b.astype(jnp.bfloat16),
                   preferred_element_type=jnp.float32)


def _mxu_dot_tb(a, b):
    # a @ b.T without materializing the transpose (contract both last dims).
    return jax.lax.dot_general(
        a.astype(jnp.bfloat16), b.astype(jnp.bfloat16),
        dimension_numbers=(((1,), (1,)), ((), ())),
        preferred_element_type=jnp.float32)


# ----------------------------- fused forward kernel -------------------------
def _gpt2_fused_kernel(
    h_ref, mask_ref,
    ln1_g_ref, ln1_b_ref, attn_w_ref, attn_b_ref, proj_w_ref, proj_b_ref,
    ln2_g_ref, ln2_b_ref, fc_w_ref, fc_b_ref, mlp_w_ref, mlp_b_ref,
    lnf_g_ref, lnf_b_ref, wte_ref,
    logits_ref,
    *, num_layers, num_heads):
    x = h_ref[0]                                   # [S, H] f32 (this batch row)
    S, H = x.shape
    D = H // num_heads
    scale = 1.0 / math.sqrt(D)

    # Combined causal + key-padding mask, built once in-kernel (hoisted out of
    # the layer loop; only key_ok depends on the batch row).
    row = jax.lax.broadcasted_iota(jnp.int32, (S, S), 0)
    col = jax.lax.broadcasted_iota(jnp.int32, (S, S), 1)
    key_ok = mask_ref[0] > 0.5                     # [1, S] -> broadcasts on rows
    valid = jnp.logical_and(col <= row, key_ok)    # [S, S]

    for l in range(num_layers):
        # ---------------- attention block ----------------
        ln1 = _layer_norm(x, ln1_g_ref[l], ln1_b_ref[l])
        qkv = _mxu_dot(ln1, attn_w_ref[l]) + attn_b_ref[l]     # [S, 3H] f32
        proj_w = proj_w_ref[l]                                 # [H, H] f32
        attn_out = proj_b_ref[l]                               # [1, H], broadcasts
        for hh in range(num_heads):
            q = qkv[:, hh * D:(hh + 1) * D]                    # [S, D]
            k = qkv[:, H + hh * D:H + (hh + 1) * D]            # [S, D]
            v = qkv[:, 2 * H + hh * D:2 * H + (hh + 1) * D]    # [S, D]
            s = _mxu_dot_tb(q, k) * scale                      # [S, S] f32
            s = jnp.where(valid, s, NEG_INF)
            m = jnp.max(s, axis=-1, keepdims=True)
            p = jnp.exp(s - m)
            p = p * pl.reciprocal(jnp.sum(p, axis=-1, keepdims=True),
                                  approx=True)
            ctx = _mxu_dot(p, v)                               # [S, D]
            # merge-heads fused with output projection: per-head row slice
            attn_out = attn_out + _mxu_dot(ctx, proj_w[hh * D:(hh + 1) * D, :])
        x = x + attn_out                                       # residual (VMEM)
        # ---------------- MLP block ----------------------
        ln2 = _layer_norm(x, ln2_g_ref[l], ln2_b_ref[l])
        hid = _gelu_new(_mxu_dot(ln2, fc_w_ref[l]) + fc_b_ref[l])
        x = x + _mxu_dot(hid, mlp_w_ref[l]) + mlp_b_ref[l]     # residual (VMEM)

    x = _layer_norm(x, lnf_g_ref[...], lnf_b_ref[...])
    # tied LM head (no bias): logits = x @ wte.T
    logits_ref[0] = _mxu_dot_tb(x, wte_ref[...]).astype(logits_ref.dtype)


# ----------------------------- parameters -----------------------------------
def init_params(key):
    H, V, L, P = HIDDEN_SIZE, VOCAB_SIZE, NUM_LAYERS, MAX_SEQ_LEN
    std = 0.02
    ks = jax.random.split(key, 6)

    def n(k, shape):
        return std * jax.random.normal(k, shape, jnp.float32)

    return {
        "wte": n(ks[0], (V, H)),
        "wpe": n(ks[1], (P, H)),
        # per-layer params stacked on a leading L axis; 1-D vectors stored as
        # [L, 1, N] so a static layer index yields a 2-D [1, N] broadcastable
        # value inside the kernel.
        "ln1_g": jnp.ones((L, 1, H), jnp.float32),
        "ln1_b": jnp.zeros((L, 1, H), jnp.float32),
        # Largest pure-MXU operands stored in bf16: half the HBM->VMEM DMA and
        # no in-kernel cast.  (proj_w stays f32: it is row-sliced per head.)
        "attn_w": n(ks[2], (L, H, 3 * H)).astype(jnp.bfloat16),
        "attn_b": jnp.zeros((L, 1, 3 * H), jnp.float32),
        "proj_w": n(ks[3], (L, H, H)),
        "proj_b": jnp.zeros((L, 1, H), jnp.float32),
        "ln2_g": jnp.ones((L, 1, H), jnp.float32),
        "ln2_b": jnp.zeros((L, 1, H), jnp.float32),
        "fc_w": n(ks[4], (L, H, 4 * H)).astype(jnp.bfloat16),
        "fc_b": jnp.zeros((L, 1, 4 * H), jnp.float32),
        "mlp_w": n(ks[5], (L, 4 * H, H)).astype(jnp.bfloat16),
        "mlp_b": jnp.zeros((L, 1, H), jnp.float32),
        "lnf_g": jnp.ones((1, H), jnp.float32),
        "lnf_b": jnp.zeros((1, H), jnp.float32),
    }


_PARAM_ORDER = ("ln1_g", "ln1_b", "attn_w", "attn_b", "proj_w", "proj_b",
                "ln2_g", "ln2_b", "fc_w", "fc_b", "mlp_w", "mlp_b",
                "lnf_g", "lnf_b", "wte")


# ----------------------------- forward ---------------------------------------
def labtop_forward(params, input_ids, attention_mask=None):
    B, S = input_ids.shape
    H, V = HIDDEN_SIZE, VOCAB_SIZE

    # embeddings (plain-JAX glue: token gather + position add)
    h = (jnp.take(params["wte"], input_ids, axis=0)
         + params["wpe"][:S][None, :, :]).astype(jnp.float32)

    if attention_mask is None:
        mask = jnp.ones((B, 1, S), jnp.float32)
    else:
        mask = attention_mask.astype(jnp.float32).reshape(B, 1, S)

    def full_spec(arr):
        nd = arr.ndim
        return pl.BlockSpec(arr.shape, lambda b, _nd=nd: (0,) * _nd)

    weights = [params[name] for name in _PARAM_ORDER]
    in_specs = [
        pl.BlockSpec((1, S, H), lambda b: (b, 0, 0)),   # embedded hidden
        pl.BlockSpec((1, 1, S), lambda b: (b, 0, 0)),   # attention mask
    ] + [full_spec(w) for w in weights]                 # weights: same block
                                                        # every step -> no
                                                        # re-DMA across grid

    kernel = functools.partial(_gpt2_fused_kernel,
                               num_layers=NUM_LAYERS, num_heads=NUM_HEADS)
    logits = pl.pallas_call(
        kernel,
        out_shape=jax.ShapeDtypeStruct((B, S, V), jnp.float32),
        grid=(B,),
        in_specs=in_specs,
        out_specs=pl.BlockSpec((1, S, V), lambda b: (b, 0, 0)),
        compiler_params=pltpu.CompilerParams(
            dimension_semantics=("parallel",)),
    )(h, mask, *weights)
    return logits


# ----------------------------- main ------------------------------------------
if __name__ == "__main__":
    key = jax.random.PRNGKey(0)
    pkey, dkey = jax.random.split(key)
    params = init_params(pkey)

    B, S = 2, 8
    input_ids = jax.random.randint(dkey, (B, S), 0, VOCAB_SIZE, dtype=jnp.int32)
    # exercise the padding-mask path (last two tokens of batch row 1 padded)
    attention_mask = jnp.ones((B, S), jnp.int32).at[1, -2:].set(0)

    fwd = jax.jit(labtop_forward)
    logits = fwd(params, input_ids, attention_mask)
    jax.block_until_ready(logits)

    assert logits.shape == (B, S, VOCAB_SIZE)
    assert bool(jnp.all(jnp.isfinite(logits)))
    print("KERNEL_OK")
</pallas_src>

<mosaic_0001>
module attributes {stable_mosaic.version = 11 : i64} {
  func.func @_gpt2_fused_kernel(%arg0: i32, %arg1: memref<1x8x32xf32, #tpu.memory_space<vmem>>, %arg2: memref<1x1x8xf32, #tpu.memory_space<vmem>>, %arg3: memref<2x1x32xf32, #tpu.memory_space<vmem>>, %arg4: memref<2x1x32xf32, #tpu.memory_space<vmem>>, %arg5: memref<2x32x96xbf16, #tpu.memory_space<vmem>>, %arg6: memref<2x1x96xf32, #tpu.memory_space<vmem>>, %arg7: memref<2x32x32xf32, #tpu.memory_space<vmem>>, %arg8: memref<2x1x32xf32, #tpu.memory_space<vmem>>, %arg9: memref<2x1x32xf32, #tpu.memory_space<vmem>>, %arg10: memref<2x1x32xf32, #tpu.memory_space<vmem>>, %arg11: memref<2x32x128xbf16, #tpu.memory_space<vmem>>, %arg12: memref<2x1x128xf32, #tpu.memory_space<vmem>>, %arg13: memref<2x128x32xbf16, #tpu.memory_space<vmem>>, %arg14: memref<2x1x32xf32, #tpu.memory_space<vmem>>, %arg15: memref<1x32xf32, #tpu.memory_space<vmem>>, %arg16: memref<1x32xf32, #tpu.memory_space<vmem>>, %arg17: memref<64x32xf32, #tpu.memory_space<vmem>>, %arg18: memref<1x8x64xf32, #tpu.memory_space<vmem>>) attributes {dimension_semantics = [#tpu.dimension_semantics<parallel>], iteration_bounds = array<i64: 2>, scalar_prefetch = 0 : i64, scratch_operands = 0 : i64, tpu.core_type = #tpu.core_type<tc>, window_params = [{transform_indices = @transform_0, window_bounds = array<i64: 1, 8, 32>}, {transform_indices = @transform_1, window_bounds = array<i64: 1, 1, 8>}, {pipeline_mode = #tpu.pipeline_mode<synchronous>, transform_indices = @transform_2, window_bounds = array<i64: 2, 1, 32>}, {pipeline_mode = #tpu.pipeline_mode<synchronous>, transform_indices = @transform_3, window_bounds = array<i64: 2, 1, 32>}, {pipeline_mode = #tpu.pipeline_mode<synchronous>, transform_indices = @transform_4, window_bounds = array<i64: 2, 32, 96>}, {pipeline_mode = #tpu.pipeline_mode<synchronous>, transform_indices = @transform_5, window_bounds = array<i64: 2, 1, 96>}, {pipeline_mode = #tpu.pipeline_mode<synchronous>, transform_indices = @transform_6, window_bounds = array<i64: 2, 32, 32>}, {pipeline_mode = #tpu.pipeline_mode<synchronous>, transform_indices = @transform_7, window_bounds = array<i64: 2, 1, 32>}, {pipeline_mode = #tpu.pipeline_mode<synchronous>, transform_indices = @transform_8, window_bounds = array<i64: 2, 1, 32>}, {pipeline_mode = #tpu.pipeline_mode<synchronous>, transform_indices = @transform_9, window_bounds = array<i64: 2, 1, 32>}, {pipeline_mode = #tpu.pipeline_mode<synchronous>, transform_indices = @transform_10, window_bounds = array<i64: 2, 32, 128>}, {pipeline_mode = #tpu.pipeline_mode<synchronous>, transform_indices = @transform_11, window_bounds = array<i64: 2, 1, 128>}, {pipeline_mode = #tpu.pipeline_mode<synchronous>, transform_indices = @transform_12, window_bounds = array<i64: 2, 128, 32>}, {pipeline_mode = #tpu.pipeline_mode<synchronous>, transform_indices = @transform_13, window_bounds = array<i64: 2, 1, 32>}, {pipeline_mode = #tpu.pipeline_mode<synchronous>, transform_indices = @transform_14, window_bounds = array<i64: 1, 32>}, {pipeline_mode = #tpu.pipeline_mode<synchronous>, transform_indices = @transform_15, window_bounds = array<i64: 1, 32>}, {pipeline_mode = #tpu.pipeline_mode<synchronous>, transform_indices = @transform_16, window_bounds = array<i64: 64, 32>}, {transform_indices = @transform_17, window_bounds = array<i64: 1, 8, 64>}]} {
    %c0 = arith.constant 0 : index
    %c0_0 = arith.constant 0 : index
    %c0_1 = arith.constant 0 : index
    %0 = vector.load %arg1[%c0, %c0_0, %c0_1] : memref<1x8x32xf32, #tpu.memory_space<vmem>>, vector<1x8x32xf32>
    %1 = vector.shape_cast %0 : vector<1x8x32xf32> to vector<8x32xf32>
    %2 = tpu.iota {dimensions = array<i32: 0>} : vector<8x8xi32>
    %3 = tpu.iota {dimensions = array<i32: 1>} : vector<8x8xi32>
    %c0_2 = arith.constant 0 : index
    %c0_3 = arith.constant 0 : index
    %c0_4 = arith.constant 0 : index
    %4 = vector.load %arg2[%c0_2, %c0_3, %c0_4] : memref<1x1x8xf32, #tpu.memory_space<vmem>>, vector<1x1x8xf32>
    %5 = vector.shape_cast %4 : vector<1x1x8xf32> to vector<1x8xf32>
    %cst = arith.constant 5.000000e-01 : f32
    %6 = vector.broadcast %cst : f32 to vector<1x8xf32>
    %7 = arith.cmpf ogt, %5, %6 : vector<1x8xf32>
    %8 = arith.cmpi sle, %3, %2 : vector<8x8xi32>
    %9 = vector.broadcast %7 : vector<1x8xi1> to vector<8x8xi1>
    %10 = arith.andi %8, %9 : vector<8x8xi1>
    %c0_5 = arith.constant 0 : index
    %c0_6 = arith.constant 0 : index
    %c0_7 = arith.constant 0 : index
    %11 = vector.load %arg3[%c0_5, %c0_6, %c0_7] : memref<2x1x32xf32, #tpu.memory_space<vmem>>, vector<1x1x32xf32>
    %12 = vector.shape_cast %11 : vector<1x1x32xf32> to vector<1x32xf32>
    %c0_8 = arith.constant 0 : index
    %c0_9 = arith.constant 0 : index
    %c0_10 = arith.constant 0 : index
    %13 = vector.load %arg4[%c0_8, %c0_9, %c0_10] : memref<2x1x32xf32, #tpu.memory_space<vmem>>, vector<1x1x32xf32>
    %14 = vector.shape_cast %13 : vector<1x1x32xf32> to vector<1x32xf32>
    %cst_11 = arith.constant dense<0.000000e+00> : vector<8xf32>
    %15 = vector.multi_reduction <add>, %1, %cst_11 [1] : vector<8x32xf32> to vector<8xf32>
    %16 = vector.shape_cast %15 : vector<8xf32> to vector<8x1xf32>
    %cst_12 = arith.constant 3.200000e+01 : f32
    %17 = vector.broadcast %cst_12 : f32 to vector<8x1xf32>
    %18 = arith.divf %16, %17 : vector<8x1xf32>
    %19 = vector.broadcast %18 : vector<8x1xf32> to vector<8x32xf32>
    %20 = arith.subf %1, %19 : vector<8x32xf32>
    %21 = arith.mulf %20, %20 : vector<8x32xf32>
    %cst_13 = arith.constant dense<0.000000e+00> : vector<8xf32>
    %22 = vector.multi_reduction <add>, %21, %cst_13 [1] : vector<8x32xf32> to vector<8xf32>
    %23 = vector.shape_cast %22 : vector<8xf32> to vector<8x1xf32>
    %cst_14 = arith.constant 3.200000e+01 : f32
    %24 = vector.broadcast %cst_14 : f32 to vector<8x1xf32>
    %25 = arith.divf %23, %24 : vector<8x1xf32>
    %26 = vector.broadcast %18 : vector<8x1xf32> to vector<8x32xf32>
    %27 = arith.subf %1, %26 : vector<8x32xf32>
    %cst_15 = arith.constant 9.99999974E-6 : f32
    %28 = vector.broadcast %cst_15 : f32 to vector<8x1xf32>
    %29 = arith.addf %25, %28 : vector<8x1xf32>
    %30 = math.rsqrt %29 : vector<8x1xf32>
    %31 = vector.broadcast %30 : vector<8x1xf32> to vector<8x32xf32>
    %32 = arith.mulf %27, %31 : vector<8x32xf32>
    %33 = vector.broadcast %12 : vector<1x32xf32> to vector<8x32xf32>
    %34 = arith.mulf %32, %33 : vector<8x32xf32>
    %35 = vector.broadcast %14 : vector<1x32xf32> to vector<8x32xf32>
    %36 = arith.addf %34, %35 : vector<8x32xf32>
    %c0_16 = arith.constant 0 : index
    %c0_17 = arith.constant 0 : index
    %c0_18 = arith.constant 0 : index
    %37 = vector.load %arg5[%c0_16, %c0_17, %c0_18] : memref<2x32x96xbf16, #tpu.memory_space<vmem>>, vector<1x32x96xbf16>
    %38 = vector.shape_cast %37 : vector<1x32x96xbf16> to vector<32x96xbf16>
    %39 = arith.truncf %36 : vector<8x32xf32> to vector<8x32xbf16>
    %cst_19 = arith.constant dense<0.000000e+00> : vector<8x96xf32>
    %40 = tpu.matmul %39, %38, %cst_19 {dimension_numbers = #tpu.dot_dimension_numbers<[1], [0], [0], [1], [0, 0, 1, 1], [], []>} : vector<8x32xbf16>, vector<32x96xbf16>, vector<8x96xf32> -> vector<8x96xf32>
    %c0_20 = arith.constant 0 : index
    %c0_21 = arith.constant 0 : index
    %c0_22 = arith.constant 0 : index
    %41 = vector.load %arg6[%c0_20, %c0_21, %c0_22] : memref<2x1x96xf32, #tpu.memory_space<vmem>>, vector<1x1x96xf32>
    %42 = vector.shape_cast %41 : vector<1x1x96xf32> to vector<1x96xf32>
    %43 = vector.broadcast %42 : vector<1x96xf32> to vector<8x96xf32>
    %44 = arith.addf %40, %43 : vector<8x96xf32>
    %c0_23 = arith.constant 0 : index
    %c0_24 = arith.constant 0 : index
    %c0_25 = arith.constant 0 : index
    %45 = vector.load %arg7[%c0_23, %c0_24, %c0_25] : memref<2x32x32xf32, #tpu.memory_space<vmem>>, vector<1x32x32xf32>
    %46 = vector.shape_cast %45 : vector<1x32x32xf32> to vector<32x32xf32>
    %c0_26 = arith.constant 0 : index
    %c0_27 = arith.constant 0 : index
    %c0_28 = arith.constant 0 : index
    %47 = vector.load %arg8[%c0_26, %c0_27, %c0_28] : memref<2x1x32xf32, #tpu.memory_space<vmem>>, vector<1x1x32xf32>
    %48 = vector.shape_cast %47 : vector<1x1x32xf32> to vector<1x32xf32>
    %49 = vector.extract_strided_slice %44 {offsets = [0, 0], sizes = [8, 8], strides = [1, 1]} : vector<8x96xf32> to vector<8x8xf32>
    %50 = vector.extract_strided_slice %44 {offsets = [0, 32], sizes = [8, 8], strides = [1, 1]} : vector<8x96xf32> to vector<8x8xf32>
    %51 = vector.extract_strided_slice %44 {offsets = [0, 64], sizes = [8, 8], strides = [1, 1]} : vector<8x96xf32> to vector<8x8xf32>
    %52 = arith.truncf %49 : vector<8x8xf32> to vector<8x8xbf16>
    %53 = arith.truncf %50 : vector<8x8xf32> to vector<8x8xbf16>
    %cst_29 = arith.constant dense<0.000000e+00> : vector<8x8xf32>
    %54 = tpu.matmul %52, %53, %cst_29 {dimension_numbers = #tpu.dot_dimension_numbers<[1], [1], [0], [0], [0, 0, 1, 0], [], []>} : vector<8x8xbf16>, vector<8x8xbf16>, vector<8x8xf32> -> vector<8x8xf32>
    %cst_30 = arith.constant 0.353553385 : f32
    %55 = vector.broadcast %cst_30 : f32 to vector<8x8xf32>
    %56 = arith.mulf %54, %55 : vector<8x8xf32>
    %cst_31 = arith.constant -1.000000e+30 : f32
    %57 = vector.broadcast %cst_31 : f32 to vector<8x8xf32>
    %58 = arith.select %10, %56, %57 : vector<8x8xi1>, vector<8x8xf32>
    %cst_32 = arith.constant dense<0xFF800000> : vector<8xf32>
    %59 = vector.multi_reduction <maximumf>, %58, %cst_32 [1] : vector<8x8xf32> to vector<8xf32>
    %60 = vector.shape_cast %59 : vector<8xf32> to vector<8x1xf32>
    %61 = vector.broadcast %60 : vector<8x1xf32> to vector<8x8xf32>
    %62 = arith.subf %58, %61 : vector<8x8xf32>
    %63 = math.exp %62 : vector<8x8xf32>
    %cst_33 = arith.constant dense<0.000000e+00> : vector<8xf32>
    %64 = vector.multi_reduction <add>, %63, %cst_33 [1] : vector<8x8xf32> to vector<8xf32>
    %65 = vector.shape_cast %64 : vector<8xf32> to vector<8x1xf32>
    %66 = tpu.reciprocal %65 {approx = true} : vector<8x1xf32> -> vector<8x1xf32>
    %67 = vector.broadcast %66 : vector<8x1xf32> to vector<8x8xf32>
    %68 = arith.mulf %63, %67 : vector<8x8xf32>
    %69 = arith.truncf %68 : vector<8x8xf32> to vector<8x8xbf16>
    %70 = arith.truncf %51 : vector<8x8xf32> to vector<8x8xbf16>
    %cst_34 = arith.constant dense<0.000000e+00> : vector<8x8xf32>
    %71 = tpu.matmul %69, %70, %cst_34 {dimension_numbers = #tpu.dot_dimension_numbers<[1], [0], [0], [1], [0, 0, 1, 1], [], []>} : vector<8x8xbf16>, vector<8x8xbf16>, vector<8x8xf32> -> vector<8x8xf32>
    %72 = vector.extract_strided_slice %46 {offsets = [0, 0], sizes = [8, 32], strides = [1, 1]} : vector<32x32xf32> to vector<8x32xf32>
    %73 = arith.truncf %71 : vector<8x8xf32> to vector<8x8xbf16>
    %74 = arith.truncf %72 : vector<8x32xf32> to vector<8x32xbf16>
    %cst_35 = arith.constant dense<0.000000e+00> : vector<8x32xf32>
    %75 = tpu.matmul %73, %74, %cst_35 {dimension_numbers = #tpu.dot_dimension_numbers<[1], [0], [0], [1], [0, 0, 1, 1], [], []>} : vector<8x8xbf16>, vector<8x32xbf16>, vector<8x32xf32> -> vector<8x32xf32>
    %76 = vector.broadcast %48 : vector<1x32xf32> to vector<8x32xf32>
    %77 = arith.addf %76, %75 : vector<8x32xf32>
    %78 = vector.extract_strided_slice %44 {offsets = [0, 8], sizes = [8, 8], strides = [1, 1]} : vector<8x96xf32> to vector<8x8xf32>
    %79 = vector.extract_strided_slice %44 {offsets = [0, 40], sizes = [8, 8], strides = [1, 1]} : vector<8x96xf32> to vector<8x8xf32>
    %80 = vector.extract_strided_slice %44 {offsets = [0, 72], sizes = [8, 8], strides = [1, 1]} : vector<8x96xf32> to vector<8x8xf32>
    %81 = arith.truncf %78 : vector<8x8xf32> to vector<8x8xbf16>
    %82 = arith.truncf %79 : vector<8x8xf32> to vector<8x8xbf16>
    %cst_36 = arith.constant dense<0.000000e+00> : vector<8x8xf32>
    %83 = tpu.matmul %81, %82, %cst_36 {dimension_numbers = #tpu.dot_dimension_numbers<[1], [1], [0], [0], [0, 0, 1, 0], [], []>} : vector<8x8xbf16>, vector<8x8xbf16>, vector<8x8xf32> -> vector<8x8xf32>
    %cst_37 = arith.constant 0.353553385 : f32
    %84 = vector.broadcast %cst_37 : f32 to vector<8x8xf32>
    %85 = arith.mulf %83, %84 : vector<8x8xf32>
    %cst_38 = arith.constant -1.000000e+30 : f32
    %86 = vector.broadcast %cst_38 : f32 to vector<8x8xf32>
    %87 = arith.select %10, %85, %86 : vector<8x8xi1>, vector<8x8xf32>
    %cst_39 = arith.constant dense<0xFF800000> : vector<8xf32>
    %88 = vector.multi_reduction <maximumf>, %87, %cst_39 [1] : vector<8x8xf32> to vector<8xf32>
    %89 = vector.shape_cast %88 : vector<8xf32> to vector<8x1xf32>
    %90 = vector.broadcast %89 : vector<8x1xf32> to vector<8x8xf32>
    %91 = arith.subf %87, %90 : vector<8x8xf32>
    %92 = math.exp %91 : vector<8x8xf32>
    %cst_40 = arith.constant dense<0.000000e+00> : vector<8xf32>
    %93 = vector.multi_reduction <add>, %92, %cst_40 [1] : vector<8x8xf32> to vector<8xf32>
    %94 = vector.shape_cast %93 : vector<8xf32> to vector<8x1xf32>
    %95 = tpu.reciprocal %94 {approx = true} : vector<8x1xf32> -> vector<8x1xf32>
    %96 = vector.broadcast %95 : vector<8x1xf32> to vector<8x8xf32>
    %97 = arith.mulf %92, %96 : vector<8x8xf32>
    %98 = arith.truncf %97 : vector<8x8xf32> to vector<8x8xbf16>
    %99 = arith.truncf %80 : vector<8x8xf32> to vector<8x8xbf16>
    %cst_41 = arith.constant dense<0.000000e+00> : vector<8x8xf32>
    %100 = tpu.matmul %98, %99, %cst_41 {dimension_numbers = #tpu.dot_dimension_numbers<[1], [0], [0], [1], [0, 0, 1, 1], [], []>} : vector<8x8xbf16>, vector<8x8xbf16>, vector<8x8xf32> -> vector<8x8xf32>
    %101 = vector.extract_strided_slice %46 {offsets = [8, 0], sizes = [8, 32], strides = [1, 1]} : vector<32x32xf32> to vector<8x32xf32>
    %102 = arith.truncf %100 : vector<8x8xf32> to vector<8x8xbf16>
    %103 = arith.truncf %101 : vector<8x32xf32> to vector<8x32xbf16>
    %cst_42 = arith.constant dense<0.000000e+00> : vector<8x32xf32>
    %104 = tpu.matmul %102, %103, %cst_42 {dimension_numbers = #tpu.dot_dimension_numbers<[1], [0], [0], [1], [0, 0, 1, 1], [], []>} : vector<8x8xbf16>, vector<8x32xbf16>, vector<8x32xf32> -> vector<8x32xf32>
    %105 = arith.addf %77, %104 : vector<8x32xf32>
    %106 = vector.extract_strided_slice %44 {offsets = [0, 16], sizes = [8, 8], strides = [1, 1]} : vector<8x96xf32> to vector<8x8xf32>
    %107 = vector.extract_strided_slice %44 {offsets = [0, 48], sizes = [8, 8], strides = [1, 1]} : vector<8x96xf32> to vector<8x8xf32>
    %108 = vector.extract_strided_slice %44 {offsets = [0, 80], sizes = [8, 8], strides = [1, 1]} : vector<8x96xf32> to vector<8x8xf32>
    %109 = arith.truncf %106 : vector<8x8xf32> to vector<8x8xbf16>
    %110 = arith.truncf %107 : vector<8x8xf32> to vector<8x8xbf16>
    %cst_43 = arith.constant dense<0.000000e+00> : vector<8x8xf32>
    %111 = tpu.matmul %109, %110, %cst_43 {dimension_numbers = #tpu.dot_dimension_numbers<[1], [1], [0], [0], [0, 0, 1, 0], [], []>} : vector<8x8xbf16>, vector<8x8xbf16>, vector<8x8xf32> -> vector<8x8xf32>
    %cst_44 = arith.constant 0.353553385 : f32
    %112 = vector.broadcast %cst_44 : f32 to vector<8x8xf32>
    %113 = arith.mulf %111, %112 : vector<8x8xf32>
    %cst_45 = arith.constant -1.000000e+30 : f32
    %114 = vector.broadcast %cst_45 : f32 to vector<8x8xf32>
    %115 = arith.select %10, %113, %114 : vector<8x8xi1>, vector<8x8xf32>
    %cst_46 = arith.constant dense<0xFF800000> : vector<8xf32>
    %116 = vector.multi_reduction <maximumf>, %115, %cst_46 [1] : vector<8x8xf32> to vector<8xf32>
    %117 = vector.shape_cast %116 : vector<8xf32> to vector<8x1xf32>
    %118 = vector.broadcast %117 : vector<8x1xf32> to vector<8x8xf32>
    %119 = arith.subf %115, %118 : vector<8x8xf32>
    %120 = math.exp %119 : vector<8x8xf32>
    %cst_47 = arith.constant dense<0.000000e+00> : vector<8xf32>
    %121 = vector.multi_reduction <add>, %120, %cst_47 [1] : vector<8x8xf32> to vector<8xf32>
    %122 = vector.shape_cast %121 : vector<8xf32> to vector<8x1xf32>
    %123 = tpu.reciprocal %122 {approx = true} : vector<8x1xf32> -> vector<8x1xf32>
    %124 = vector.broadcast %123 : vector<8x1xf32> to vector<8x8xf32>
    %125 = arith.mulf %120, %124 : vector<8x8xf32>
    %126 = arith.truncf %125 : vector<8x8xf32> to vector<8x8xbf16>
    %127 = arith.truncf %108 : vector<8x8xf32> to vector<8x8xbf16>
    %cst_48 = arith.constant dense<0.000000e+00> : vector<8x8xf32>
    %128 = tpu.matmul %126, %127, %cst_48 {dimension_numbers = #tpu.dot_dimension_numbers<[1], [0], [0], [1], [0, 0, 1, 1], [], []>} : vector<8x8xbf16>, vector<8x8xbf16>, vector<8x8xf32> -> vector<8x8xf32>
    %129 = vector.extract_strided_slice %46 {offsets = [16, 0], sizes = [8, 32], strides = [1, 1]} : vector<32x32xf32> to vector<8x32xf32>
    %130 = arith.truncf %128 : vector<8x8xf32> to vector<8x8xbf16>
    %131 = arith.truncf %129 : vector<8x32xf32> to vector<8x32xbf16>
    %cst_49 = arith.constant dense<0.000000e+00> : vector<8x32xf32>
    %132 = tpu.matmul %130, %131, %cst_49 {dimension_numbers = #tpu.dot_dimension_numbers<[1], [0], [0], [1], [0, 0, 1, 1], [], []>} : vector<8x8xbf16>, vector<8x32xbf16>, vector<8x32xf32> -> vector<8x32xf32>
    %133 = arith.addf %105, %132 : vector<8x32xf32>
    %134 = vector.extract_strided_slice %44 {offsets = [0, 24], sizes = [8, 8], strides = [1, 1]} : vector<8x96xf32> to vector<8x8xf32>
    %135 = vector.extract_strided_slice %44 {offsets = [0, 56], sizes = [8, 8], strides = [1, 1]} : vector<8x96xf32> to vector<8x8xf32>
    %136 = vector.extract_strided_slice %44 {offsets = [0, 88], sizes = [8, 8], strides = [1, 1]} : vector<8x96xf32> to vector<8x8xf32>
    %137 = arith.truncf %134 : vector<8x8xf32> to vector<8x8xbf16>
    %138 = arith.truncf %135 : vector<8x8xf32> to vector<8x8xbf16>
    %cst_50 = arith.constant dense<0.000000e+00> : vector<8x8xf32>
    %139 = tpu.matmul %137, %138, %cst_50 {dimension_numbers = #tpu.dot_dimension_numbers<[1], [1], [0], [0], [0, 0, 1, 0], [], []>} : vector<8x8xbf16>, vector<8x8xbf16>, vector<8x8xf32> -> vector<8x8xf32>
    %cst_51 = arith.constant 0.353553385 : f32
    %140 = vector.broadcast %cst_51 : f32 to vector<8x8xf32>
    %141 = arith.mulf %139, %140 : vector<8x8xf32>
    %cst_52 = arith.constant -1.000000e+30 : f32
    %142 = vector.broadcast %cst_52 : f32 to vector<8x8xf32>
    %143 = arith.select %10, %141, %142 : vector<8x8xi1>, vector<8x8xf32>
    %cst_53 = arith.constant dense<0xFF800000> : vector<8xf32>
    %144 = vector.multi_reduction <maximumf>, %143, %cst_53 [1] : vector<8x8xf32> to vector<8xf32>
    %145 = vector.shape_cast %144 : vector<8xf32> to vector<8x1xf32>
    %146 = vector.broadcast %145 : vector<8x1xf32> to vector<8x8xf32>
    %147 = arith.subf %143, %146 : vector<8x8xf32>
    %148 = math.exp %147 : vector<8x8xf32>
    %cst_54 = arith.constant dense<0.000000e+00> : vector<8xf32>
    %149 = vector.multi_reduction <add>, %148, %cst_54 [1] : vector<8x8xf32> to vector<8xf32>
    %150 = vector.shape_cast %149 : vector<8xf32> to vector<8x1xf32>
    %151 = tpu.reciprocal %150 {approx = true} : vector<8x1xf32> -> vector<8x1xf32>
    %152 = vector.broadcast %151 : vector<8x1xf32> to vector<8x8xf32>
    %153 = arith.mulf %148, %152 : vector<8x8xf32>
    %154 = arith.truncf %153 : vector<8x8xf32> to vector<8x8xbf16>
    %155 = arith.truncf %136 : vector<8x8xf32> to vector<8x8xbf16>
    %cst_55 = arith.constant dense<0.000000e+00> : vector<8x8xf32>
    %156 = tpu.matmul %154, %155, %cst_55 {dimension_numbers = #tpu.dot_dimension_numbers<[1], [0], [0], [1], [0, 0, 1, 1], [], []>} : vector<8x8xbf16>, vector<8x8xbf16>, vector<8x8xf32> -> vector<8x8xf32>
    %157 = vector.extract_strided_slice %46 {offsets = [24, 0], sizes = [8, 32], strides = [1, 1]} : vector<32x32xf32> to vector<8x32xf32>
    %158 = arith.truncf %156 : vector<8x8xf32> to vector<8x8xbf16>
    %159 = arith.truncf %157 : vector<8x32xf32> to vector<8x32xbf16>
    %cst_56 = arith.constant dense<0.000000e+00> : vector<8x32xf32>
    %160 = tpu.matmul %158, %159, %cst_56 {dimension_numbers = #tpu.dot_dimension_numbers<[1], [0], [0], [1], [0, 0, 1, 1], [], []>} : vector<8x8xbf16>, vector<8x32xbf16>, vector<8x32xf32> -> vector<8x32xf32>
    %161 = arith.addf %133, %160 : vector<8x32xf32>
    %162 = arith.addf %1, %161 : vector<8x32xf32>
    %c0_57 = arith.constant 0 : index
    %c0_58 = arith.constant 0 : index
    %c0_59 = arith.constant 0 : index
    %163 = vector.load %arg9[%c0_57, %c0_58, %c0_59] : memref<2x1x32xf32, #tpu.memory_space<vmem>>, vector<1x1x32xf32>
    %164 = vector.shape_cast %163 : vector<1x1x32xf32> to vector<1x32xf32>
    %c0_60 = arith.constant 0 : index
    %c0_61 = arith.constant 0 : index
    %c0_62 = arith.constant 0 : index
    %165 = vector.load %arg10[%c0_60, %c0_61, %c0_62] : memref<2x1x32xf32, #tpu.memory_space<vmem>>, vector<1x1x32xf32>
    %166 = vector.shape_cast %165 : vector<1x1x32xf32> to vector<1x32xf32>
    %cst_63 = arith.constant dense<0.000000e+00> : vector<8xf32>
    %167 = vector.multi_reduction <add>, %162, %cst_63 [1] : vector<8x32xf32> to vector<8xf32>
    %168 = vector.shape_cast %167 : vector<8xf32> to vector<8x1xf32>
    %cst_64 = arith.constant 3.200000e+01 : f32
    %169 = vector.broadcast %cst_64 : f32 to vector<8x1xf32>
    %170 = arith.divf %168, %169 : vector<8x1xf32>
    %171 = vector.broadcast %170 : vector<8x1xf32> to vector<8x32xf32>
    %172 = arith.subf %162, %171 : vector<8x32xf32>
    %173 = arith.mulf %172, %172 : vector<8x32xf32>
    %cst_65 = arith.constant dense<0.000000e+00> : vector<8xf32>
    %174 = vector.multi_reduction <add>, %173, %cst_65 [1] : vector<8x32xf32> to vector<8xf32>
    %175 = vector.shape_cast %174 : vector<8xf32> to vector<8x1xf32>
    %cst_66 = arith.constant 3.200000e+01 : f32
    %176 = vector.broadcast %cst_66 : f32 to vector<8x1xf32>
    %177 = arith.divf %175, %176 : vector<8x1xf32>
    %178 = vector.broadcast %170 : vector<8x1xf32> to vector<8x32xf32>
    %179 = arith.subf %162, %178 : vector<8x32xf32>
    %cst_67 = arith.constant 9.99999974E-6 : f32
    %180 = vector.broadcast %cst_67 : f32 to vector<8x1xf32>
    %181 = arith.addf %177, %180 : vector<8x1xf32>
    %182 = math.rsqrt %181 : vector<8x1xf32>
    %183 = vector.broadcast %182 : vector<8x1xf32> to vector<8x32xf32>
    %184 = arith.mulf %179, %183 : vector<8x32xf32>
    %185 = vector.broadcast %164 : vector<1x32xf32> to vector<8x32xf32>
    %186 = arith.mulf %184, %185 : vector<8x32xf32>
    %187 = vector.broadcast %166 : vector<1x32xf32> to vector<8x32xf32>
    %188 = arith.addf %186, %187 : vector<8x32xf32>
    %c0_68 = arith.constant 0 : index
    %c0_69 = arith.constant 0 : index
    %c0_70 = arith.constant 0 : index
    %189 = vector.load %arg11[%c0_68, %c0_69, %c0_70] : memref<2x32x128xbf16, #tpu.memory_space<vmem>>, vector<1x32x128xbf16>
    %190 = vector.shape_cast %189 : vector<1x32x128xbf16> to vector<32x128xbf16>
    %191 = arith.truncf %188 : vector<8x32xf32> to vector<8x32xbf16>
    %cst_71 = arith.constant dense<0.000000e+00> : vector<8x128xf32>
    %192 = tpu.matmul %191, %190, %cst_71 {dimension_numbers = #tpu.dot_dimension_numbers<[1], [0], [0], [1], [0, 0, 1, 1], [], []>} : vector<8x32xbf16>, vector<32x128xbf16>, vector<8x128xf32> -> vector<8x128xf32>
    %c0_72 = arith.constant 0 : index
    %c0_73 = arith.constant 0 : index
    %c0_74 = arith.constant 0 : index
    %193 = vector.load %arg12[%c0_72, %c0_73, %c0_74] : memref<2x1x128xf32, #tpu.memory_space<vmem>>, vector<1x1x128xf32>
    %194 = vector.shape_cast %193 : vector<1x1x128xf32> to vector<1x128xf32>
    %195 = vector.broadcast %194 : vector<1x128xf32> to vector<8x128xf32>
    %196 = arith.addf %192, %195 : vector<8x128xf32>
    %cst_75 = arith.constant 5.000000e-01 : f32
    %197 = vector.broadcast %cst_75 : f32 to vector<8x128xf32>
    %198 = arith.mulf %197, %196 : vector<8x128xf32>
    %cst_76 = arith.constant 4.471500e-02 : f32
    %199 = vector.broadcast %cst_76 : f32 to vector<8x128xf32>
    %200 = arith.mulf %199, %196 : vector<8x128xf32>
    %201 = arith.mulf %200, %196 : vector<8x128xf32>
    %202 = arith.mulf %201, %196 : vector<8x128xf32>
    %203 = arith.addf %196, %202 : vector<8x128xf32>
    %cst_77 = arith.constant 0.797884583 : f32
    %204 = vector.broadcast %cst_77 : f32 to vector<8x128xf32>
    %205 = arith.mulf %204, %203 : vector<8x128xf32>
    %206 = math.tanh %205 : vector<8x128xf32>
    %cst_78 = arith.constant 1.000000e+00 : f32
    %207 = vector.broadcast %cst_78 : f32 to vector<8x128xf32>
    %208 = arith.addf %207, %206 : vector<8x128xf32>
    %209 = arith.mulf %198, %208 : vector<8x128xf32>
    %c0_79 = arith.constant 0 : index
    %c0_80 = arith.constant 0 : index
    %c0_81 = arith.constant 0 : index
    %210 = vector.load %arg13[%c0_79, %c0_80, %c0_81] : memref<2x128x32xbf16, #tpu.memory_space<vmem>>, vector<1x128x32xbf16>
    %211 = vector.shape_cast %210 : vector<1x128x32xbf16> to vector<128x32xbf16>
    %212 = arith.truncf %209 : vector<8x128xf32> to vector<8x128xbf16>
    %cst_82 = arith.constant dense<0.000000e+00> : vector<8x32xf32>
    %213 = tpu.matmul %212, %211, %cst_82 {dimension_numbers = #tpu.dot_dimension_numbers<[1], [0], [0], [1], [0, 0, 1, 1], [], []>} : vector<8x128xbf16>, vector<128x32xbf16>, vector<8x32xf32> -> vector<8x32xf32>
    %214 = arith.addf %162, %213 : vector<8x32xf32>
    %c0_83 = arith.constant 0 : index
    %c0_84 = arith.constant 0 : index
    %c0_85 = arith.constant 0 : index
    %215 = vector.load %arg14[%c0_83, %c0_84, %c0_85] : memref<2x1x32xf32, #tpu.memory_space<vmem>>, vector<1x1x32xf32>
    %216 = vector.shape_cast %215 : vector<1x1x32xf32> to vector<1x32xf32>
    %217 = vector.broadcast %216 : vector<1x32xf32> to vector<8x32xf32>
    %218 = arith.addf %214, %217 : vector<8x32xf32>
    %c1 = arith.constant 1 : index
    %c0_86 = arith.constant 0 : index
    %c0_87 = arith.constant 0 : index
    %219 = vector.load %arg3[%c1, %c0_86, %c0_87] : memref<2x1x32xf32, #tpu.memory_space<vmem>>, vector<1x1x32xf32>
    %220 = vector.shape_cast %219 : vector<1x1x32xf32> to vector<1x32xf32>
    %c1_88 = arith.constant 1 : index
    %c0_89 = arith.constant 0 : index
    %c0_90 = arith.constant 0 : index
    %221 = vector.load %arg4[%c1_88, %c0_89, %c0_90] : memref<2x1x32xf32, #tpu.memory_space<vmem>>, vector<1x1x32xf32>
    %222 = vector.shape_cast %221 : vector<1x1x32xf32> to vector<1x32xf32>
    %cst_91 = arith.constant dense<0.000000e+00> : vector<8xf32>
    %223 = vector.multi_reduction <add>, %218, %cst_91 [1] : vector<8x32xf32> to vector<8xf32>
    %224 = vector.shape_cast %223 : vector<8xf32> to vector<8x1xf32>
    %cst_92 = arith.constant 3.200000e+01 : f32
    %225 = vector.broadcast %cst_92 : f32 to vector<8x1xf32>
    %226 = arith.divf %224, %225 : vector<8x1xf32>
    %227 = vector.broadcast %226 : vector<8x1xf32> to vector<8x32xf32>
    %228 = arith.subf %218, %227 : vector<8x32xf32>
    %229 = arith.mulf %228, %228 : vector<8x32xf32>
    %cst_93 = arith.constant dense<0.000000e+00> : vector<8xf32>
    %230 = vector.multi_reduction <add>, %229, %cst_93 [1] : vector<8x32xf32> to vector<8xf32>
    %231 = vector.shape_cast %230 : vector<8xf32> to vector<8x1xf32>
    %cst_94 = arith.constant 3.200000e+01 : f32
    %232 = vector.broadcast %cst_94 : f32 to vector<8x1xf32>
    %233 = arith.divf %231, %232 : vector<8x1xf32>
    %234 = vector.broadcast %226 : vector<8x1xf32> to vector<8x32xf32>
    %235 = arith.subf %218, %234 : vector<8x32xf32>
    %cst_95 = arith.constant 9.99999974E-6 : f32
    %236 = vector.broadcast %cst_95 : f32 to vector<8x1xf32>
    %237 = arith.addf %233, %236 : vector<8x1xf32>
    %238 = math.rsqrt %237 : vector<8x1xf32>
    %239 = vector.broadcast %238 : vector<8x1xf32> to vector<8x32xf32>
    %240 = arith.mulf %235, %239 : vector<8x32xf32>
    %241 = vector.broadcast %220 : vector<1x32xf32> to vector<8x32xf32>
    %242 = arith.mulf %240, %241 : vector<8x32xf32>
    %243 = vector.broadcast %222 : vector<1x32xf32> to vector<8x32xf32>
    %244 = arith.addf %242, %243 : vector<8x32xf32>
    %c1_96 = arith.constant 1 : index
    %c0_97 = arith.constant 0 : index
    %c0_98 = arith.constant 0 : index
    %245 = vector.load %arg5[%c1_96, %c0_97, %c0_98] : memref<2x32x96xbf16, #tpu.memory_space<vmem>>, vector<1x32x96xbf16>
    %246 = vector.shape_cast %245 : vector<1x32x96xbf16> to vector<32x96xbf16>
    %247 = arith.truncf %244 : vector<8x32xf32> to vector<8x32xbf16>
    %cst_99 = arith.constant dense<0.000000e+00> : vector<8x96xf32>
    %248 = tpu.matmul %247, %246, %cst_99 {dimension_numbers = #tpu.dot_dimension_numbers<[1], [0], [0], [1], [0, 0, 1, 1], [], []>} : vector<8x32xbf16>, vector<32x96xbf16>, vector<8x96xf32> -> vector<8x96xf32>
    %c1_100 = arith.constant 1 : index
    %c0_101 = arith.constant 0 : index
    %c0_102 = arith.constant 0 : index
    %249 = vector.load %arg6[%c1_100, %c0_101, %c0_102] : memref<2x1x96xf32, #tpu.memory_space<vmem>>, vector<1x1x96xf32>
    %250 = vector.shape_cast %249 : vector<1x1x96xf32> to vector<1x96xf32>
    %251 = vector.broadcast %250 : vector<1x96xf32> to vector<8x96xf32>
    %252 = arith.addf %248, %251 : vector<8x96xf32>
    %c1_103 = arith.constant 1 : index
    %c0_104 = arith.constant 0 : index
    %c0_105 = arith.constant 0 : index
    %253 = vector.load %arg7[%c1_103, %c0_104, %c0_105] : memref<2x32x32xf32, #tpu.memory_space<vmem>>, vector<1x32x32xf32>
    %254 = vector.shape_cast %253 : vector<1x32x32xf32> to vector<32x32xf32>
    %c1_106 = arith.constant 1 : index
    %c0_107 = arith.constant 0 : index
    %c0_108 = arith.constant 0 : index
    %255 = vector.load %arg8[%c1_106, %c0_107, %c0_108] : memref<2x1x32xf32, #tpu.memory_space<vmem>>, vector<1x1x32xf32>
    %256 = vector.shape_cast %255 : vector<1x1x32xf32> to vector<1x32xf32>
    %257 = vector.extract_strided_slice %252 {offsets = [0, 0], sizes = [8, 8], strides = [1, 1]} : vector<8x96xf32> to vector<8x8xf32>
    %258 = vector.extract_strided_slice %252 {offsets = [0, 32], sizes = [8, 8], strides = [1, 1]} : vector<8x96xf32> to vector<8x8xf32>
    %259 = vector.extract_strided_slice %252 {offsets = [0, 64], sizes = [8, 8], strides = [1, 1]} : vector<8x96xf32> to vector<8x8xf32>
    %260 = arith.truncf %257 : vector<8x8xf32> to vector<8x8xbf16>
    %261 = arith.truncf %258 : vector<8x8xf32> to vector<8x8xbf16>
    %cst_109 = arith.constant dense<0.000000e+00> : vector<8x8xf32>
    %262 = tpu.matmul %260, %261, %cst_109 {dimension_numbers = #tpu.dot_dimension_numbers<[1], [1], [0], [0], [0, 0, 1, 0], [], []>} : vector<8x8xbf16>, vector<8x8xbf16>, vector<8x8xf32> -> vector<8x8xf32>
    %cst_110 = arith.constant 0.353553385 : f32
    %263 = vector.broadcast %cst_110 : f32 to vector<8x8xf32>
    %264 = arith.mulf %262, %263 : vector<8x8xf32>
    %cst_111 = arith.constant -1.000000e+30 : f32
    %265 = vector.broadcast %cst_111 : f32 to vector<8x8xf32>
    %266 = arith.select %10, %264, %265 : vector<8x8xi1>, vector<8x8xf32>
    %cst_112 = arith.constant dense<0xFF800000> : vector<8xf32>
    %267 = vector.multi_reduction <maximumf>, %266, %cst_112 [1] : vector<8x8xf32> to vector<8xf32>
    %268 = vector.shape_cast %267 : vector<8xf32> to vector<8x1xf32>
    %269 = vector.broadcast %268 : vector<8x1xf32> to vector<8x8xf32>
    %270 = arith.subf %266, %269 : vector<8x8xf32>
    %271 = math.exp %270 : vector<8x8xf32>
    %cst_113 = arith.constant dense<0.000000e+00> : vector<8xf32>
    %272 = vector.multi_reduction <add>, %271, %cst_113 [1] : vector<8x8xf32> to vector<8xf32>
    %273 = vector.shape_cast %272 : vector<8xf32> to vector<8x1xf32>
    %274 = tpu.reciprocal %273 {approx = true} : vector<8x1xf32> -> vector<8x1xf32>
    %275 = vector.broadcast %274 : vector<8x1xf32> to vector<8x8xf32>
    %276 = arith.mulf %271, %275 : vector<8x8xf32>
    %277 = arith.truncf %276 : vector<8x8xf32> to vector<8x8xbf16>
    %278 = arith.truncf %259 : vector<8x8xf32> to vector<8x8xbf16>
    %cst_114 = arith.constant dense<0.000000e+00> : vector<8x8xf32>
    %279 = tpu.matmul %277, %278, %cst_114 {dimension_numbers = #tpu.dot_dimension_numbers<[1], [0], [0], [1], [0, 0, 1, 1], [], []>} : vector<8x8xbf16>, vector<8x8xbf16>, vector<8x8xf32> -> vector<8x8xf32>
    %280 = vector.extract_strided_slice %254 {offsets = [0, 0], sizes = [8, 32], strides = [1, 1]} : vector<32x32xf32> to vector<8x32xf32>
    %281 = arith.truncf %279 : vector<8x8xf32> to vector<8x8xbf16>
    %282 = arith.truncf %280 : vector<8x32xf32> to vector<8x32xbf16>
    %cst_115 = arith.constant dense<0.000000e+00> : vector<8x32xf32>
    %283 = tpu.matmul %281, %282, %cst_115 {dimension_numbers = #tpu.dot_dimension_numbers<[1], [0], [0], [1], [0, 0, 1, 1], [], []>} : vector<8x8xbf16>, vector<8x32xbf16>, vector<8x32xf32> -> vector<8x32xf32>
    %284 = vector.broadcast %256 : vector<1x32xf32> to vector<8x32xf32>
    %285 = arith.addf %284, %283 : vector<8x32xf32>
    %286 = vector.extract_strided_slice %252 {offsets = [0, 8], sizes = [8, 8], strides = [1, 1]} : vector<8x96xf32> to vector<8x8xf32>
    %287 = vector.extract_strided_slice %252 {offsets = [0, 40], sizes = [8, 8], strides = [1, 1]} : vector<8x96xf32> to vector<8x8xf32>
    %288 = vector.extract_strided_slice %252 {offsets = [0, 72], sizes = [8, 8], strides = [1, 1]} : vector<8x96xf32> to vector<8x8xf32>
    %289 = arith.truncf %286 : vector<8x8xf32> to vector<8x8xbf16>
    %290 = arith.truncf %287 : vector<8x8xf32> to vector<8x8xbf16>
    %cst_116 = arith.constant dense<0.000000e+00> : vector<8x8xf32>
    %291 = tpu.matmul %289, %290, %cst_116 {dimension_numbers = #tpu.dot_dimension_numbers<[1], [1], [0], [0], [0, 0, 1, 0], [], []>} : vector<8x8xbf16>, vector<8x8xbf16>, vector<8x8xf32> -> vector<8x8xf32>
    %cst_117 = arith.constant 0.353553385 : f32
    %292 = vector.broadcast %cst_117 : f32 to vector<8x8xf32>
    %293 = arith.mulf %291, %292 : vector<8x8xf32>
    %cst_118 = arith.constant -1.000000e+30 : f32
    %294 = vector.broadcast %cst_118 : f32 to vector<8x8xf32>
    %295 = arith.select %10, %293, %294 : vector<8x8xi1>, vector<8x8xf32>
    %cst_119 = arith.constant dense<0xFF800000> : vector<8xf32>
    %296 = vector.multi_reduction <maximumf>, %295, %cst_119 [1] : vector<8x8xf32> to vector<8xf32>
    %297 = vector.shape_cast %296 : vector<8xf32> to vector<8x1xf32>
    %298 = vector.broadcast %297 : vector<8x1xf32> to vector<8x8xf32>
    %299 = arith.subf %295, %298 : vector<8x8xf32>
    %300 = math.exp %299 : vector<8x8xf32>
    %cst_120 = arith.constant dense<0.000000e+00> : vector<8xf32>
    %301 = vector.multi_reduction <add>, %300, %cst_120 [1] : vector<8x8xf32> to vector<8xf32>
    %302 = vector.shape_cast %301 : vector<8xf32> to vector<8x1xf32>
    %303 = tpu.reciprocal %302 {approx = true} : vector<8x1xf32> -> vector<8x1xf32>
    %304 = vector.broadcast %303 : vector<8x1xf32> to vector<8x8xf32>
    %305 = arith.mulf %300, %304 : vector<8x8xf32>
    %306 = arith.truncf %305 : vector<8x8xf32> to vector<8x8xbf16>
    %307 = arith.truncf %288 : vector<8x8xf32> to vector<8x8xbf16>
    %cst_121 = arith.constant dense<0.000000e+00> : vector<8x8xf32>
    %308 = tpu.matmul %306, %307, %cst_121 {dimension_numbers = #tpu.dot_dimension_numbers<[1], [0], [0], [1], [0, 0, 1, 1], [], []>} : vector<8x8xbf16>, vector<8x8xbf16>, vector<8x8xf32> -> vector<8x8xf32>
    %309 = vector.extract_strided_slice %254 {offsets = [8, 0], sizes = [8, 32], strides = [1, 1]} : vector<32x32xf32> to vector<8x32xf32>
    %310 = arith.truncf %308 : vector<8x8xf32> to vector<8x8xbf16>
    %311 = arith.truncf %309 : vector<8x32xf32> to vector<8x32xbf16>
    %cst_122 = arith.constant dense<0.000000e+00> : vector<8x32xf32>
    %312 = tpu.matmul %310, %311, %cst_122 {dimension_numbers = #tpu.dot_dimension_numbers<[1], [0], [0], [1], [0, 0, 1, 1], [], []>} : vector<8x8xbf16>, vector<8x32xbf16>, vector<8x32xf32> -> vector<8x32xf32>
    %313 = arith.addf %285, %312 : vector<8x32xf32>
    %314 = vector.extract_strided_slice %252 {offsets = [0, 16], sizes = [8, 8], strides = [1, 1]} : vector<8x96xf32> to vector<8x8xf32>
    %315 = vector.extract_strided_slice %252 {offsets = [0, 48], sizes = [8, 8], strides = [1, 1]} : vector<8x96xf32> to vector<8x8xf32>
    %316 = vector.extract_strided_slice %252 {offsets = [0, 80], sizes = [8, 8], strides = [1, 1]} : vector<8x96xf32> to vector<8x8xf32>
    %317 = arith.truncf %314 : vector<8x8xf32> to vector<8x8xbf16>
    %318 = arith.truncf %315 : vector<8x8xf32> to vector<8x8xbf16>
    %cst_123 = arith.constant dense<0.000000e+00> : vector<8x8xf32>
    %319 = tpu.matmul %317, %318, %cst_123 {dimension_numbers = #tpu.dot_dimension_numbers<[1], [1], [0], [0], [0, 0, 1, 0], [], []>} : vector<8x8xbf16>, vector<8x8xbf16>, vector<8x8xf32> -> vector<8x8xf32>
    %cst_124 = arith.constant 0.353553385 : f32
    %320 = vector.broadcast %cst_124 : f32 to vector<8x8xf32>
    %321 = arith.mulf %319, %320 : vector<8x8xf32>
    %cst_125 = arith.constant -1.000000e+30 : f32
    %322 = vector.broadcast %cst_125 : f32 to vector<8x8xf32>
    %323 = arith.select %10, %321, %322 : vector<8x8xi1>, vector<8x8xf32>
    %cst_126 = arith.constant dense<0xFF800000> : vector<8xf32>
    %324 = vector.multi_reduction <maximumf>, %323, %cst_126 [1] : vector<8x8xf32> to vector<8xf32>
    %325 = vector.shape_cast %324 : vector<8xf32> to vector<8x1xf32>
    %326 = vector.broadcast %325 : vector<8x1xf32> to vector<8x8xf32>
    %327 = arith.subf %323, %326 : vector<8x8xf32>
    %328 = math.exp %327 : vector<8x8xf32>
    %cst_127 = arith.constant dense<0.000000e+00> : vector<8xf32>
    %329 = vector.multi_reduction <add>, %328, %cst_127 [1] : vector<8x8xf32> to vector<8xf32>
    %330 = vector.shape_cast %329 : vector<8xf32> to vector<8x1xf32>
    %331 = tpu.reciprocal %330 {approx = true} : vector<8x1xf32> -> vector<8x1xf32>
    %332 = vector.broadcast %331 : vector<8x1xf32> to vector<8x8xf32>
    %333 = arith.mulf %328, %332 : vector<8x8xf32>
    %334 = arith.truncf %333 : vector<8x8xf32> to vector<8x8xbf16>
    %335 = arith.truncf %316 : vector<8x8xf32> to vector<8x8xbf16>
    %cst_128 = arith.constant dense<0.000000e+00> : vector<8x8xf32>
    %336 = tpu.matmul %334, %335, %cst_128 {dimension_numbers = #tpu.dot_dimension_numbers<[1], [0], [0], [1], [0, 0, 1, 1], [], []>} : vector<8x8xbf16>, vector<8x8xbf16>, vector<8x8xf32> -> vector<8x8xf32>
    %337 = vector.extract_strided_slice %254 {offsets = [16, 0], sizes = [8, 32], strides = [1, 1]} : vector<32x32xf32> to vector<8x32xf32>
    %338 = arith.truncf %336 : vector<8x8xf32> to vector<8x8xbf16>
    %339 = arith.truncf %337 : vector<8x32xf32> to vector<8x32xbf16>
    %cst_129 = arith.constant dense<0.000000e+00> : vector<8x32xf32>
    %340 = tpu.matmul %338, %339, %cst_129 {dimension_numbers = #tpu.dot_dimension_numbers<[1], [0], [0], [1], [0, 0, 1, 1], [], []>} : vector<8x8xbf16>, vector<8x32xbf16>, vector<8x32xf32> -> vector<8x32xf32>
    %341 = arith.addf %313, %340 : vector<8x32xf32>
    %342 = vector.extract_strided_slice %252 {offsets = [0, 24], sizes = [8, 8], strides = [1, 1]} : vector<8x96xf32> to vector<8x8xf32>
    %343 = vector.extract_strided_slice %252 {offsets = [0, 56], sizes = [8, 8], strides = [1, 1]} : vector<8x96xf32> to vector<8x8xf32>
    %344 = vector.extract_strided_slice %252 {offsets = [0, 88], sizes = [8, 8], strides = [1, 1]} : vector<8x96xf32> to vector<8x8xf32>
    %345 = arith.truncf %342 : vector<8x8xf32> to vector<8x8xbf16>
    %346 = arith.truncf %343 : vector<8x8xf32> to vector<8x8xbf16>
    %cst_130 = arith.constant dense<0.000000e+00> : vector<8x8xf32>
    %347 = tpu.matmul %345, %346, %cst_130 {dimension_numbers = #tpu.dot_dimension_numbers<[1], [1], [0], [0], [0, 0, 1, 0], [], []>} : vector<8x8xbf16>, vector<8x8xbf16>, vector<8x8xf32> -> vector<8x8xf32>
    %cst_131 = arith.constant 0.353553385 : f32
    %348 = vector.broadcast %cst_131 : f32 to vector<8x8xf32>
    %349 = arith.mulf %347, %348 : vector<8x8xf32>
    %cst_132 = arith.constant -1.000000e+30 : f32
    %350 = vector.broadcast %cst_132 : f32 to vector<8x8xf32>
    %351 = arith.select %10, %349, %350 : vector<8x8xi1>, vector<8x8xf32>
    %cst_133 = arith.constant dense<0xFF800000> : vector<8xf32>
    %352 = vector.multi_reduction <maximumf>, %351, %cst_133 [1] : vector<8x8xf32> to vector<8xf32>
    %353 = vector.shape_cast %352 : vector<8xf32> to vector<8x1xf32>
    %354 = vector.broadcast %353 : vector<8x1xf32> to vector<8x8xf32>
    %355 = arith.subf %351, %354 : vector<8x8xf32>
    %356 = math.exp %355 : vector<8x8xf32>
    %cst_134 = arith.constant dense<0.000000e+00> : vector<8xf32>
    %357 = vector.multi_reduction <add>, %356, %cst_134 [1] : vector<8x8xf32> to vector<8xf32>
    %358 = vector.shape_cast %357 : vector<8xf32> to vector<8x1xf32>
    %359 = tpu.reciprocal %358 {approx = true} : vector<8x1xf32> -> vector<8x1xf32>
    %360 = vector.broadcast %359 : vector<8x1xf32> to vector<8x8xf32>
    %361 = arith.mulf %356, %360 : vector<8x8xf32>
    %362 = arith.truncf %361 : vector<8x8xf32> to vector<8x8xbf16>
    %363 = arith.truncf %344 : vector<8x8xf32> to vector<8x8xbf16>
    %cst_135 = arith.constant dense<0.000000e+00> : vector<8x8xf32>
    %364 = tpu.matmul %362, %363, %cst_135 {dimension_numbers = #tpu.dot_dimension_numbers<[1], [0], [0], [1], [0, 0, 1, 1], [], []>} : vector<8x8xbf16>, vector<8x8xbf16>, vector<8x8xf32> -> vector<8x8xf32>
    %365 = vector.extract_strided_slice %254 {offsets = [24, 0], sizes = [8, 32], strides = [1, 1]} : vector<32x32xf32> to vector<8x32xf32>
    %366 = arith.truncf %364 : vector<8x8xf32> to vector<8x8xbf16>
    %367 = arith.truncf %365 : vector<8x32xf32> to vector<8x32xbf16>
    %cst_136 = arith.constant dense<0.000000e+00> : vector<8x32xf32>
    %368 = tpu.matmul %366, %367, %cst_136 {dimension_numbers = #tpu.dot_dimension_numbers<[1], [0], [0], [1], [0, 0, 1, 1], [], []>} : vector<8x8xbf16>, vector<8x32xbf16>, vector<8x32xf32> -> vector<8x32xf32>
    %369 = arith.addf %341, %368 : vector<8x32xf32>
    %370 = arith.addf %218, %369 : vector<8x32xf32>
    %c1_137 = arith.constant 1 : index
    %c0_138 = arith.constant 0 : index
    %c0_139 = arith.constant 0 : index
    %371 = vector.load %arg9[%c1_137, %c0_138, %c0_139] : memref<2x1x32xf32, #tpu.memory_space<vmem>>, vector<1x1x32xf32>
    %372 = vector.shape_cast %371 : vector<1x1x32xf32> to vector<1x32xf32>
    %c1_140 = arith.constant 1 : index
    %c0_141 = arith.constant 0 : index
    %c0_142 = arith.constant 0 : index
    %373 = vector.load %arg10[%c1_140, %c0_141, %c0_142] : memref<2x1x32xf32, #tpu.memory_space<vmem>>, vector<1x1x32xf32>
    %374 = vector.shape_cast %373 : vector<1x1x32xf32> to vector<1x32xf32>
    %cst_143 = arith.constant dense<0.000000e+00> : vector<8xf32>
    %375 = vector.multi_reduction <add>, %370, %cst_143 [1] : vector<8x32xf32> to vector<8xf32>
    %376 = vector.shape_cast %375 : vector<8xf32> to vector<8x1xf32>
    %cst_144 = arith.constant 3.200000e+01 : f32
    %377 = vector.broadcast %cst_144 : f32 to vector<8x1xf32>
    %378 = arith.divf %376, %377 : vector<8x1xf32>
    %379 = vector.broadcast %378 : vector<8x1xf32> to vector<8x32xf32>
    %380 = arith.subf %370, %379 : vector<8x32xf32>
    %381 = arith.mulf %380, %380 : vector<8x32xf32>
    %cst_145 = arith.constant dense<0.000000e+00> : vector<8xf32>
    %382 = vector.multi_reduction <add>, %381, %cst_145 [1] : vector<8x32xf32> to vector<8xf32>
    %383 = vector.shape_cast %382 : vector<8xf32> to vector<8x1xf32>
    %cst_146 = arith.constant 3.200000e+01 : f32
    %384 = vector.broadcast %cst_146 : f32 to vector<8x1xf32>
    %385 = arith.divf %383, %384 : vector<8x1xf32>
    %386 = vector.broadcast %378 : vector<8x1xf32> to vector<8x32xf32>
    %387 = arith.subf %370, %386 : vector<8x32xf32>
    %cst_147 = arith.constant 9.99999974E-6 : f32
    %388 = vector.broadcast %cst_147 : f32 to vector<8x1xf32>
    %389 = arith.addf %385, %388 : vector<8x1xf32>
    %390 = math.rsqrt %389 : vector<8x1xf32>
    %391 = vector.broadcast %390 : vector<8x1xf32> to vector<8x32xf32>
    %392 = arith.mulf %387, %391 : vector<8x32xf32>
    %393 = vector.broadcast %372 : vector<1x32xf32> to vector<8x32xf32>
    %394 = arith.mulf %392, %393 : vector<8x32xf32>
    %395 = vector.broadcast %374 : vector<1x32xf32> to vector<8x32xf32>
    %396 = arith.addf %394, %395 : vector<8x32xf32>
    %c1_148 = arith.constant 1 : index
    %c0_149 = arith.constant 0 : index
    %c0_150 = arith.constant 0 : index
    %397 = vector.load %arg11[%c1_148, %c0_149, %c0_150] : memref<2x32x128xbf16, #tpu.memory_space<vmem>>, vector<1x32x128xbf16>
    %398 = vector.shape_cast %397 : vector<1x32x128xbf16> to vector<32x128xbf16>
    %399 = arith.truncf %396 : vector<8x32xf32> to vector<8x32xbf16>
    %cst_151 = arith.constant dense<0.000000e+00> : vector<8x128xf32>
    %400 = tpu.matmul %399, %398, %cst_151 {dimension_numbers = #tpu.dot_dimension_numbers<[1], [0], [0], [1], [0, 0, 1, 1], [], []>} : vector<8x32xbf16>, vector<32x128xbf16>, vector<8x128xf32> -> vector<8x128xf32>
    %c1_152 = arith.constant 1 : index
    %c0_153 = arith.constant 0 : index
    %c0_154 = arith.constant 0 : index
    %401 = vector.load %arg12[%c1_152, %c0_153, %c0_154] : memref<2x1x128xf32, #tpu.memory_space<vmem>>, vector<1x1x128xf32>
    %402 = vector.shape_cast %401 : vector<1x1x128xf32> to vector<1x128xf32>
    %403 = vector.broadcast %402 : vector<1x128xf32> to vector<8x128xf32>
    %404 = arith.addf %400, %403 : vector<8x128xf32>
    %cst_155 = arith.constant 5.000000e-01 : f32
    %405 = vector.broadcast %cst_155 : f32 to vector<8x128xf32>
    %406 = arith.mulf %405, %404 : vector<8x128xf32>
    %cst_156 = arith.constant 4.471500e-02 : f32
    %407 = vector.broadcast %cst_156 : f32 to vector<8x128xf32>
    %408 = arith.mulf %407, %404 : vector<8x128xf32>
    %409 = arith.mulf %408, %404 : vector<8x128xf32>
    %410 = arith.mulf %409, %404 : vector<8x128xf32>
    %411 = arith.addf %404, %410 : vector<8x128xf32>
    %cst_157 = arith.constant 0.797884583 : f32
    %412 = vector.broadcast %cst_157 : f32 to vector<8x128xf32>
    %413 = arith.mulf %412, %411 : vector<8x128xf32>
    %414 = math.tanh %413 : vector<8x128xf32>
    %cst_158 = arith.constant 1.000000e+00 : f32
    %415 = vector.broadcast %cst_158 : f32 to vector<8x128xf32>
    %416 = arith.addf %415, %414 : vector<8x128xf32>
    %417 = arith.mulf %406, %416 : vector<8x128xf32>
    %c1_159 = arith.constant 1 : index
    %c0_160 = arith.constant 0 : index
    %c0_161 = arith.constant 0 : index
    %418 = vector.load %arg13[%c1_159, %c0_160, %c0_161] : memref<2x128x32xbf16, #tpu.memory_space<vmem>>, vector<1x128x32xbf16>
    %419 = vector.shape_cast %418 : vector<1x128x32xbf16> to vector<128x32xbf16>
    %420 = arith.truncf %417 : vector<8x128xf32> to vector<8x128xbf16>
    %cst_162 = arith.constant dense<0.000000e+00> : vector<8x32xf32>
    %421 = tpu.matmul %420, %419, %cst_162 {dimension_numbers = #tpu.dot_dimension_numbers<[1], [0], [0], [1], [0, 0, 1, 1], [], []>} : vector<8x128xbf16>, vector<128x32xbf16>, vector<8x32xf32> -> vector<8x32xf32>
    %422 = arith.addf %370, %421 : vector<8x32xf32>
    %c1_163 = arith.constant 1 : index
    %c0_164 = arith.constant 0 : index
    %c0_165 = arith.constant 0 : index
    %423 = vector.load %arg14[%c1_163, %c0_164, %c0_165] : memref<2x1x32xf32, #tpu.memory_space<vmem>>, vector<1x1x32xf32>
    %424 = vector.shape_cast %423 : vector<1x1x32xf32> to vector<1x32xf32>
    %425 = vector.broadcast %424 : vector<1x32xf32> to vector<8x32xf32>
    %426 = arith.addf %422, %425 : vector<8x32xf32>
    %c0_166 = arith.constant 0 : index
    %c0_167 = arith.constant 0 : index
    %427 = vector.load %arg15[%c0_166, %c0_167] : memref<1x32xf32, #tpu.memory_space<vmem>>, vector<1x32xf32>
    %c0_168 = arith.constant 0 : index
    %c0_169 = arith.constant 0 : index
    %428 = vector.load %arg16[%c0_168, %c0_169] : memref<1x32xf32, #tpu.memory_space<vmem>>, vector<1x32xf32>
    %cst_170 = arith.constant dense<0.000000e+00> : vector<8xf32>
    %429 = vector.multi_reduction <add>, %426, %cst_170 [1] : vector<8x32xf32> to vector<8xf32>
    %430 = vector.shape_cast %429 : vector<8xf32> to vector<8x1xf32>
    %cst_171 = arith.constant 3.200000e+01 : f32
    %431 = vector.broadcast %cst_171 : f32 to vector<8x1xf32>
    %432 = arith.divf %430, %431 : vector<8x1xf32>
    %433 = vector.broadcast %432 : vector<8x1xf32> to vector<8x32xf32>
    %434 = arith.subf %426, %433 : vector<8x32xf32>
    %435 = arith.mulf %434, %434 : vector<8x32xf32>
    %cst_172 = arith.constant dense<0.000000e+00> : vector<8xf32>
    %436 = vector.multi_reduction <add>, %435, %cst_172 [1] : vector<8x32xf32> to vector<8xf32>
    %437 = vector.shape_cast %436 : vector<8xf32> to vector<8x1xf32>
    %cst_173 = arith.constant 3.200000e+01 : f32
    %438 = vector.broadcast %cst_173 : f32 to vector<8x1xf32>
    %439 = arith.divf %437, %438 : vector<8x1xf32>
    %440 = vector.broadcast %432 : vector<8x1xf32> to vector<8x32xf32>
    %441 = arith.subf %426, %440 : vector<8x32xf32>
    %cst_174 = arith.constant 9.99999974E-6 : f32
    %442 = vector.broadcast %cst_174 : f32 to vector<8x1xf32>
    %443 = arith.addf %439, %442 : vector<8x1xf32>
    %444 = math.rsqrt %443 : vector<8x1xf32>
    %445 = vector.broadcast %444 : vector<8x1xf32> to vector<8x32xf32>
    %446 = arith.mulf %441, %445 : vector<8x32xf32>
    %447 = vector.broadcast %427 : vector<1x32xf32> to vector<8x32xf32>
    %448 = arith.mulf %446, %447 : vector<8x32xf32>
    %449 = vector.broadcast %428 : vector<1x32xf32> to vector<8x32xf32>
    %450 = arith.addf %448, %449 : vector<8x32xf32>
    %c0_175 = arith.constant 0 : index
    %c0_176 = arith.constant 0 : index
    %451 = vector.load %arg17[%c0_175, %c0_176] : memref<64x32xf32, #tpu.memory_space<vmem>>, vector<64x32xf32>
    %452 = arith.truncf %450 : vector<8x32xf32> to vector<8x32xbf16>
    %453 = arith.truncf %451 : vector<64x32xf32> to vector<64x32xbf16>
    %cst_177 = arith.constant dense<0.000000e+00> : vector<8x64xf32>
    %454 = tpu.matmul %452, %453, %cst_177 {dimension_numbers = #tpu.dot_dimension_numbers<[1], [1], [0], [0], [0, 0, 1, 0], [], []>} : vector<8x32xbf16>, vector<64x32xbf16>, vector<8x64xf32> -> vector<8x64xf32>
    %c0_178 = arith.constant 0 : index
    %c0_179 = arith.constant 0 : index
    %c0_180 = arith.constant 0 : index
    %455 = vector.load %arg18[%c0_178, %c0_179, %c0_180] : memref<1x8x64xf32, #tpu.memory_space<vmem>>, vector<1x8x64xf32>
    %456 = vector.shape_cast %455 : vector<1x8x64xf32> to vector<8x64xf32>
    %457 = vector.shape_cast %454 : vector<8x64xf32> to vector<1x8x64xf32>
    tpu.vector_store %arg18[%c0_178, %c0_179, %c0_180], %457 {strides = array<i32>} : memref<1x8x64xf32, #tpu.memory_space<vmem>>, vector<1x8x64xf32>,
    return
  }
  func.func @transform_0(%arg0: i32) -> (i32, i32, i32) {
    %c0_i32 = arith.constant 0 : i32
    %c0_i32_0 = arith.constant 0 : i32
    %c0_i32_1 = arith.constant 0 : i32
    return %arg0, %c0_i32, %c0_i32_0 : i32, i32, i32
  }
  func.func @transform_1(%arg0: i32) -> (i32, i32, i32) {
    %c0_i32 = arith.constant 0 : i32
    %c0_i32_0 = arith.constant 0 : i32
    %c0_i32_1 = arith.constant 0 : i32
    return %arg0, %c0_i32, %c0_i32_0 : i32, i32, i32
  }
  func.func @transform_2(%arg0: i32) -> (i32, i32, i32) {
    %c0_i32 = arith.constant 0 : i32
    %c0_i32_0 = arith.constant 0 : i32
    %c0_i32_1 = arith.constant 0 : i32
    %c0_i32_2 = arith.constant 0 : i32
    return %c0_i32, %c0_i32_0, %c0_i32_1 : i32, i32, i32
  }
  func.func @transform_3(%arg0: i32) -> (i32, i32, i32) {
    %c0_i32 = arith.constant 0 : i32
    %c0_i32_0 = arith.constant 0 : i32
    %c0_i32_1 = arith.constant 0 : i32
    %c0_i32_2 = arith.constant 0 : i32
    return %c0_i32, %c0_i32_0, %c0_i32_1 : i32, i32, i32
  }
  func.func @transform_4(%arg0: i32) -> (i32, i32, i32) {
    %c0_i32 = arith.constant 0 : i32
    %c0_i32_0 = arith.constant 0 : i32
    %c0_i32_1 = arith.constant 0 : i32
    %c0_i32_2 = arith.constant 0 : i32
    return %c0_i32, %c0_i32_0, %c0_i32_1 : i32, i32, i32
  }
  func.func @transform_5(%arg0: i32) -> (i32, i32, i32) {
    %c0_i32 = arith.constant 0 : i32
    %c0_i32_0 = arith.constant 0 : i32
    %c0_i32_1 = arith.constant 0 : i32
    %c0_i32_2 = arith.constant 0 : i32
    return %c0_i32, %c0_i32_0, %c0_i32_1 : i32, i32, i32
  }
  func.func @transform_6(%arg0: i32) -> (i32, i32, i32) {
    %c0_i32 = arith.constant 0 : i32
    %c0_i32_0 = arith.constant 0 : i32
    %c0_i32_1 = arith.constant 0 : i32
    %c0_i32_2 = arith.constant 0 : i32
    return %c0_i32, %c0_i32_0, %c0_i32_1 : i32, i32, i32
  }
  func.func @transform_7(%arg0: i32) -> (i32, i32, i32) {
    %c0_i32 = arith.constant 0 : i32
    %c0_i32_0 = arith.constant 0 : i32
    %c0_i32_1 = arith.constant 0 : i32
    %c0_i32_2 = arith.constant 0 : i32
    return %c0_i32, %c0_i32_0, %c0_i32_1 : i32, i32, i32
  }
  func.func @transform_8(%arg0: i32) -> (i32, i32, i32) {
    %c0_i32 = arith.constant 0 : i32
    %c0_i32_0 = arith.constant 0 : i32
    %c0_i32_1 = arith.constant 0 : i32
    %c0_i32_2 = arith.constant 0 : i32
    return %c0_i32, %c0_i32_0, %c0_i32_1 : i32, i32, i32
  }
  func.func @transform_9(%arg0: i32) -> (i32, i32, i32) {
    %c0_i32 = arith.constant 0 : i32
    %c0_i32_0 = arith.constant 0 : i32
    %c0_i32_1 = arith.constant 0 : i32
    %c0_i32_2 = arith.constant 0 : i32
    return %c0_i32, %c0_i32_0, %c0_i32_1 : i32, i32, i32
  }
  func.func @transform_10(%arg0: i32) -> (i32, i32, i32) {
    %c0_i32 = arith.constant 0 : i32
    %c0_i32_0 = arith.constant 0 : i32
    %c0_i32_1 = arith.constant 0 : i32
    %c0_i32_2 = arith.constant 0 : i32
    return %c0_i32, %c0_i32_0, %c0_i32_1 : i32, i32, i32
  }
  func.func @transform_11(%arg0: i32) -> (i32, i32, i32) {
    %c0_i32 = arith.constant 0 : i32
    %c0_i32_0 = arith.constant 0 : i32
    %c0_i32_1 = arith.constant 0 : i32
    %c0_i32_2 = arith.constant 0 : i32
    return %c0_i32, %c0_i32_0, %c0_i32_1 : i32, i32, i32
  }
  func.func @transform_12(%arg0: i32) -> (i32, i32, i32) {
    %c0_i32 = arith.constant 0 : i32
    %c0_i32_0 = arith.constant 0 : i32
    %c0_i32_1 = arith.constant 0 : i32
    %c0_i32_2 = arith.constant 0 : i32
    return %c0_i32, %c0_i32_0, %c0_i32_1 : i32, i32, i32
  }
  func.func @transform_13(%arg0: i32) -> (i32, i32, i32) {
    %c0_i32 = arith.constant 0 : i32
    %c0_i32_0 = arith.constant 0 : i32
    %c0_i32_1 = arith.constant 0 : i32
    %c0_i32_2 = arith.constant 0 : i32
    return %c0_i32, %c0_i32_0, %c0_i32_1 : i32, i32, i32
  }
  func.func @transform_14(%arg0: i32) -> (i32, i32) {
    %c0_i32 = arith.constant 0 : i32
    %c0_i32_0 = arith.constant 0 : i32
    %c0_i32_1 = arith.constant 0 : i32
    return %c0_i32, %c0_i32_0 : i32, i32
  }
  func.func @transform_15(%arg0: i32) -> (i32, i32) {
    %c0_i32 = arith.constant 0 : i32
    %c0_i32_0 = arith.constant 0 : i32
    %c0_i32_1 = arith.constant 0 : i32
    return %c0_i32, %c0_i32_0 : i32, i32
  }
  func.func @transform_16(%arg0: i32) -> (i32, i32) {
    %c0_i32 = arith.constant 0 : i32
    %c0_i32_0 = arith.constant 0 : i32
    %c0_i32_1 = arith.constant 0 : i32
    return %c0_i32, %c0_i32_0 : i32, i32
  }
  func.func @transform_17(%arg0: i32) -> (i32, i32, i32) {
    %c0_i32 = arith.constant 0 : i32
    %c0_i32_0 = arith.constant 0 : i32
    %c0_i32_1 = arith.constant 0 : i32
    return %arg0, %c0_i32, %c0_i32_0 : i32, i32, i32
  }
}

</mosaic_0001>

<bundles_post_ra>
// kernel: labtop_forward.1
= control target key start
LH: loop header
LB: loop body
LE: loop exit
PB: predicated region body
PF: predicated region fallthrough
CT: control target
= control target key end

     0   :  { %s4001_s0 = inlined_call_operand.vmem [shape: f32[2,8,32], index: 0, kind: input, shape index: {}]   ;;  %s4002_s1 = inlined_call_operand.vmem [shape: f32[2,1,8], index: 1, kind: input, shape index: {}]   ;;  %s4003_s2 = inlined_call_operand.vmem [shape: f32[2,1,32], index: 2, kind: input, shape index: {}]   ;;  %s4004_s3 = inlined_call_operand.vmem [shape: f32[2,1,32], index: 3, kind: input, shape index: {}]   ;;  %s4005_s4 = inlined_call_operand.vmem [shape: bf16[2,32,96], index: 4, kind: input, shape index: {}]   ;;  %s4006_s5 = inlined_call_operand.vmem [shape: f32[2,1,96], index: 5, kind: input, shape index: {}]   ;;  %s4007_s6 = inlined_call_operand.vmem [shape: f32[2,32,32], index: 6, kind: input, shape index: {}]   ;;  %s4008_s7 = inlined_call_operand.vmem [shape: f32[2,1,32], index: 7, kind: input, shape index: {}]   ;;  %s4009_s8 = inlined_call_operand.vmem [shape: f32[2,1,32], index: 8, kind: input, shape index: {}]   ;;  %s4010_s9 = inlined_call_operand.vmem [shape: f32[2,1,32], index: 9, kind: input, shape index: {}]   ;;  %s4011_s10 = inlined_call_operand.vmem [shape: bf16[2,32,128], index: 10, kind: input, shape index: {}]   ;;  %s4012_s11 = inlined_call_operand.vmem [shape: f32[2,1,128], index: 11, kind: input, shape index: {}]   ;;  %s4013_s12 = inlined_call_operand.vmem [shape: bf16[2,128,32], index: 12, kind: input, shape index: {}]   ;;  %s4014_s13 = inlined_call_operand.vmem [shape: f32[2,1,32], index: 13, kind: input, shape index: {}]   ;;  %s4015_s14 = inlined_call_operand.vmem [shape: f32[1,32], index: 14, kind: input, shape index: {}]   ;;  %s4016_s15 = inlined_call_operand.vmem [shape: f32[1,32], index: 15, kind: input, shape index: {}]   ;;  %s4017_s16 = inlined_call_operand.vmem [shape: f32[64,32], index: 16, kind: input, shape index: {}]   ;;  %s4018_s17 = inlined_call_operand.hbm [shape: f32[2,8,64], index: 17, kind: output, shape index: {}]  }
   0x1   :  { %4031 = sst [smem:[#allocation7_spill]] %s4001_s0 }
   0x2   :  { %4032 = sst [smem:[#allocation8_spill]] %s4002_s1 }
   0x3   :  { %4033 = sst [smem:[#allocation9_spill]] %s4003_s2 }
   0x4   :  { %4034 = sst [smem:[#allocation10_spill]] %s4004_s3 }
   0x5   :  { %22 = vsyncpa [#allocation3], 0 }
   0x6   :  { %24 = vsyncpa [#allocation3 + $0x1], 0  ;;  %s3433_s24 = smov 0   ;;  %s3435_s25 = smov 0  }
   0x7   :  { %s3437_s26 = smov 0   ;;  %s3439_s27 = smov 0  }
   0x8 LB: > { %4035 = sst [smem:[#allocation5_spill]] %s3322_s26  ;;  %s3454_s28 = sadd.s32 4294967295, %s3326_s27   ;;  %s3326_s27 = sphi %s3439_s27, %s4060_s27   ;;  %s3322_s26 = sphi %s3437_s26, %s4057_s26   ;;  %s3318_s25 = sphi %s3435_s25, %s4059_s25   ;;  %s3314_s24 = sphi %s3433_s24, %s4058_s24  }
   0x9   : > { %s2713_s29 = sadd.s32 4294967294, %s3326_s27   ;;  %s3458_s0 = sadd.s32 1, %s3326_s27  }
   0xa   : > { %s404_s30 = sadd.s32 1, %s3322_s26  ;;  %s401_s18 = ssub.s32 %s3326_s27, %s3458_s0 }
   0xb   : > { %p414_p0 = scmp.ne.s32.totalorder %s3322_s26, %s3318_s25  ;;  %p402_p1 = scmp.eq.s32.totalorder %s401_s18, 0 }
   0xc   : > { %p415_p2 = scmp.eq.s32.totalorder %s3454_s28, 1  ;;  %p420_p3 = scmp.ne.s32.totalorder %s3318_s25, %s3314_s24 }
   0xd   : > { %p421_p4 = scmp.eq.s32.totalorder %s2713_s29, 1  ;;  %p2716_p7 = scmp.ge.s32.totalorder %s3326_s27, 1 }
   0xe   : > { %s3469_s19 = scalar_select %p402_p1, %s3322_s26, %s404_s30  }
   0xf   : > { %p3471_p5 = por %p415_p2, %p414_p0  ;;  %p3475_p6 = por %p421_p4, %p420_p3 }
  0x10   : > { %4036 = sst [smem:[#allocation6_spill]] %s3469_s19  ;;  %p497_p8 = scmp.lt.s32.totalorder %s3326_s27, 3 }
  0x12   : > { %p498_p9 = pnand %p2716_p7, %p497_p8 }
  0x13   : > { %p551_p10 = scmp.lt.s32.totalorder (!%p498_p9), %s3454_s28, 1  ;;  %vm576_vm0 = vcmask (!%p498_p9), 261120   ;;  %s4039_s30 = sld [smem:[#allocation7_spill]] (!%p498_p9)  ;;  %v3194_v7 = vld [vmem:[%s4005_s4] sm:$0xff] (!%p498_p9)   ;;  %v3328_v8 = vmov (!%p498_p9), 0.0   ;;  %vm3329_vm1 = vmmov (!%p498_p9), 0   ;;  %v560_v31 = vlaneseq (!%p498_p9) }
  0x14   : > { %501 = sbr.rel (%p498_p9) target bundleno = 8266 (0x204a), region = 88  ;;  %2913 = vmatprep.subr.bf16.mxu0 (!%p498_p9), %v3328_v8  ;;  %2917 = vmatprep.mubr.msk.bf16.mxu0 (!%p498_p9), %vm3329_vm1, %v3328_v8  ;;  %v3195_v9 = vld [vmem:[%s4005_s4 + $0x8] sm:$0xff] (!%p498_p9)   ;;  %s4040_s2 = sld [smem:[#allocation9_spill]] (!%p498_p9)  ;;  %v2721_v20 = vld [vmem:[%s4006_s5] ss:$0 sm:$0xff] (!%p498_p9)  ;;  %vm747_vm2 = vcmask (!%p498_p9), 1043456  }
  0x15   : > { %2914 = vmatpush3.bf16.msra.mxu0 (!%p498_p9), %v3194_v7  ;;  %2921 = vmatprep.subr.bf16.mxu1 (!%p498_p9), %v3328_v8  ;;  %s4041_s3 = sld [smem:[#allocation10_spill]] (!%p498_p9)  ;;  %s4027_s23 = smov (!%p498_p9), 64   ;;  %vm681_vm3 = vcmask (!%p498_p9), 64512   ;;  %v561_v33 = vshrl.u32 (!%p498_p9), %v560_v31, 7  ;;  %v3332_v35 = vmov (!%p498_p9), 0   ;;  %v563_v37 = vand.u32 (!%p498_p9), 127, %v560_v31 }
  0x16   : > { %2915 = vmatprep.subr.bf16.mxu0 (!%p498_p9), %v3328_v8  ;;  %2923 = vmatprep.mubr.msk.bf16.mxu1 (!%p498_p9), %vm3329_vm1, %v3328_v8  ;;  %s4029_s26 = smov (!%p498_p9), 96   ;;  %v672_v59 = vld [vmem:[%s4007_s6] sm:$0xff] (!%p498_p9)  ;;  %s4021_s19 = smov (!%p498_p9), 112   ;;  %vm2629_vm8 = vcmask (!%p498_p9), 523264  }
  0x17   : > { %v570_v34 = vsub.s32 (!%p498_p9), 0, %v561_v33  ;;  %vm566_vm5 = vcmp.le.s32.totalorder (!%p498_p9), %v563_v37, %v561_v33  ;;  %v792_v60 = vpack.c.bf16 (!%p498_p9), %v672_v59, %v672_v59  ;;  %s4022_s29 = smov (!%p498_p9), 48  }
  0x19   : > { %2916 = vmatpush3.bf16.msra.mxu0 (!%p498_p9), %v3195_v9  ;;  %v797_v61 = vsel (!%p498_p9), %vm747_vm2, %v792_v60, 0 }
  0x1a   : > { %2927 = vmatprep.subr.bf16.mxu0 (!%p498_p9), %v3328_v8  ;;  %v2719_v14 = vld [vmem:[%s4040_s2] ss:$0 sm:$0xff] (!%p498_p9) }
  0x1b   : > { %s3483_s21 = scalar_select %p551_p10, %s3454_s28, 1  ;;  %v2720_v16 = vld [vmem:[%s4041_s3] ss:$0 sm:$0xff] }
  0x1d   : > { %s2718_s22 = sshll.u32 %s3483_s21, 3 }
  0x1e   : > { %s554_s18 = scalar_lea.vmem %s4039_s30, %s2718_s22  ;;  %s4042_s30 = sld [smem:[#allocation8_spill]] }
  0x1f   : > { %v3489_v0 = vld [vmem:[%s554_s18] sm:$0xff]  ;;  %s4028_s22 = smov 120  }
  0x20   : > { %v577_v1 = vsel %vm576_vm0, %v3489_v0, 0.0 }
  0x21   : > { %578 = vadd.xlane.f32.xlu0 %v577_v1 }
  0x24   : > { %s557_s18 = scalar_lea.vmem %s4042_s30, %s3483_s21  ;;  %s4030_s21 = smov 88  }
  0x25   : > { %v564_v32 = vld [vmem:[%s557_s18] sm:$0x1]  ;;  %s4020_s30 = smov 56   ;;  %s4023_s18 = smov 80  }
  0x26   : > { %vm565_vm4 = vcmp.gt.f32.partialorder %v564_v32, 0.5 }
  0x27   : > { %v567_v36 = vsel %vm565_vm4, 1, %v3332_v35 }
  0x28   : > { %v571_v38 = vrot.slane %v567_v36, %v570_v34 }
  0x2a   : > { %vm572_vm6 = vcmp.eq.s32.totalorder %v571_v38, 1 }
  0x2b   : > { %vm3539_vm7 = vmand %vm566_vm5, %vm572_vm6 }
  0xae   : > { %v579_v2 = vpop.xlane.xlu0 %578 }
  0xaf   : > { %v581_v3 = vmul.f32 0.03125, %v579_v2 }
  0xb1   : > { %v582_v4 = vsub.f32 %v3489_v0, %v581_v3 }
  0xb3   : > { %v583_v5 = vmul.f32 %v582_v4, %v582_v4 }
  0xb5   : > { %v584_v6 = vsel %vm576_vm0, %v583_v5, 0.0 }
  0xb6   : > { %585 = vadd.xlane.f32.xlu0 %v584_v6 }
 0x143   : > { %v586_v10 = vpop.xlane.xlu0 %585 }
 0x144   : > { %v587_v11 = vmul.f32 0.03125, %v586_v10 }
 0x146   : > { %v588_v12 = vadd.f32 1e-05, %v587_v11 }
 0x148   : > { %3218 = vrsqrt.f32 %v588_v12 }
 0x152   : > { %v3219_v13 = vpop.eup %3218 }
 0x153   : > { %v590_v15 = vmul.f32 %v3219_v13, %v582_v4 }
 0x155   : > { %v597_v17 = vmul.f32 %v2719_v14, %v590_v15 }
 0x157   : > { %v604_v18 = vadd.f32 %v2720_v16, %v597_v17 }
 0x159   : > { %v609_v19 = vpack.c.bf16 %v604_v18, %v604_v18 }
 0x15b   : > { %2918 = vmatmul.mubr.msk.bf16.vlgmr.msra.gmra.mrb[0].mxu0 %vm576_vm0, %v609_v19  ;;  %v673_v19 = vld [vmem:[%s4007_s6 + $0x8] sm:$0xff] }
 0x15c   : > { %2929 = vmatprep.mubr.msk.bf16.mxu0 %vm3329_vm1, %v3328_v8 }
 0x22e   : > { %v666_v21 = vpop.f32.mrb[0].mxu0 }
 0x22f   : > { %v667_v22 = vadd.f32 %v2721_v20, %v666_v21  ;;  %v2919_v23 = vpop.f32.mrb[1].mxu0  ;;  %v959_v20 = vpack.c.bf16 %v673_v19, %v673_v19 }
 0x230   : > { %v669_v24 = vpop.f32.mrb[2].mxu0 }
 0x231   : > { %v3521_v25 = vpack.c.bf16 %v667_v22, %v667_v22  ;;  %v2920_v26 = vpop.f32.mrb[3].mxu0  ;;  %v964_v21 = vsel %vm747_vm2, %v959_v20, 0 }
 0x233   : > { %742 = vrot.lane.b32.xlu0 %v3521_v25, %s4027_s23  ;;  %679 = vrot.lane.b32.xlu1 %v3521_v25, %s4029_s26  ;;  %s4046_s26 = smov 96   ;;  %s4049_s23 = smov 80  }
 0x2a5   : > { %v743_v27 = vpop.permute.xlu0 %742  ;;  %v680_v28 = vpop.permute.xlu1 %679 }
 0x2a6   : > { %v749_v29 = vsel %vm747_vm2, %v743_v27, 0  ;;  %v686_v30 = vsel %vm681_vm3, %v680_v28, 0 }
 0x2a7   : > { %2922 = vmatpush3.bf16.xpose.msra.mxu1 %v686_v30  ;;  %2928 = vmatpush3.bf16.msra.mxu0 %v749_v29 }
 0x2a8   : > { %2939 = vmatprep.subr.bf16.mxu0 %v3328_v8  ;;  %2933 = vmatprep.subr.bf16.mxu1 %v3328_v8 }
 0x2ae   : > { %2924 = vmatmul.mubr.msk.bf16.vlgmr.msra.gmra.mrb[0].mxu1 %vm681_vm3, %v3521_v25 }
 0x2af   : > { %2935 = vmatprep.mubr.msk.bf16.mxu1 %vm3329_vm1, %v3328_v8  ;;  %2934 = vmatpush3.bf16.msra.mxu1 %v797_v61 }
 0x2b0   : > { %2945 = vmatprep.subr.bf16.mxu1 %v3328_v8 }
 0x381   : > { %v722_v40 = vpop.f32.mrb[0].mxu1 }
 0x382   : > { %v728_v41 = vmul.f32 0.35355338, %v722_v40  ;;  %v2925_v42 = vpop.f32.mrb[1].mxu1 }
 0x383   : > { %v725_v43 = vpop.f32.mrb[2].mxu1 }
 0x384   : > { %v2926_v44 = vpop.f32.mrb[3].mxu1  ;;  %v729_v45 = vsel %vm3539_vm7, %v728_v41, -1e+30 }
 0x385   : > { %v730_v46 = vsel %vm681_vm3, %v729_v45, -inf }
 0x386   : > { %731 = vmax.xlane.f32.xlu1 %v730_v46 }
 0x413   : > { %v732_v47 = vpop.xlane.xlu1 %731 }
 0x414   : > { %v733_v48 = vsub.f32 %v729_v45, %v732_v47 }
 0x416   : > { %v734_v49 = vmul.f32 1.442695, %v733_v48 }
 0x418   : > { %3220 = vpow2.f32 %v734_v49 }
 0x422   : > { %v3221_v50 = vpop.eup %3220 }
 0x423   : > { %v736_v51 = vsel %vm681_vm3, %v3221_v50, 0.0 }
 0x424   : > { %737 = vadd.xlane.f32.xlu0 %v736_v51 }
 0x43a   : > { %848 = vrot.lane.b32.xlu0 %v3521_v25, %s4030_s21  ;;  %s4047_s21 = smov 120  }
 0x43e   : > { %846 = vrot.lane.b32.xlu0 %v3521_v25, %s4028_s22  ;;  %s4050_s22 = smov 112  }
 0x4b1   : > { %v738_v52 = vpop.xlane.xlu0 %737 }
 0x4b2   : > { %3222 = vrcp.f32 %v738_v52 }
 0x4b5   : > { %v849_v55 = vpop.permute.xlu0 %848 }
 0x4b6   : > { %v854_v57 = vsel %vm681_vm3, %v849_v55, 0 }
 0x4b9   : > { %v847_v58 = vpop.permute.xlu0 %846 }
 0x4bc   : > { %v3223_v53 = vpop.eup %3222 }
 0x4bd   : > { %v740_v54 = vmul.f32 %v3223_v53, %v3221_v50 }
 0x4bf   : > { %v741_v56 = vpack.c.bf16 %v740_v54, %v740_v54  ;;  %v2728_v54 = vld [vmem:[%s4008_s7] ss:$0 sm:$0xff] }
 0x4c1   : > { %2930 = vmatmul.mubr.msk.bf16.vlgmr.msra.gmra.mrb[4].mxu0 %vm681_vm3, %v741_v56 }
 0x4c2   : > { %2940 = vmatpush3.bf16.xpose.msra.mxu0 %v854_v57  ;;  %2941 = vmatprep.mubr.msk.bf16.mxu0 %vm3329_vm1, %v3328_v8 }
 0x4c3   : > { %2951 = vmatprep.subr.bf16.mxu0 %v3328_v8 }
 0x4c9   : > { %2942 = vmatmul.mubr.msk.bf16.vlgmr.msra.gmra.mrb[8].mxu0 %vm681_vm3, %v847_v58 }
 0x4ca   : > { %2953 = vmatprep.mubr.msk.bf16.mxu0 %vm3329_vm1, %v3328_v8  ;;  %2952 = vmatpush3.bf16.msra.mxu0 %v964_v21 }
 0x4cb   : > { %2963 = vmatprep.subr.bf16.mxu0 %v3328_v8 }
 0x594   : > { %v785_v62 = vpop.f32.mrb[4].mxu0 }
 0x595   : > { %v791_v63 = vpack.c.bf16 %v785_v62, %v785_v62  ;;  %v2931_v1 = vpop.f32.mrb[5].mxu0 }
 0x596   : > { %v788_v2 = vpop.f32.mrb[6].mxu0 }
 0x597   : > { %v2932_v3 = vpop.f32.mrb[7].mxu0  ;;  %2936 = vmatmul.mubr.msk.bf16.vlgmr.msra.gmra.mrb[4].mxu1 %vm681_vm3, %v791_v63 }
 0x598   : > { %2947 = vmatprep.mubr.msk.bf16.mxu1 %vm3329_vm1, %v3328_v8 }
 0x59c   : > { %v890_v4 = vpop.f32.mrb[8].mxu0 }
 0x59d   : > { %v896_v5 = vmul.f32 0.35355338, %v890_v4  ;;  %v2943_v6 = vpop.f32.mrb[9].mxu0 }
 0x59e   : > { %v893_v7 = vpop.f32.mrb[10].mxu0 }
 0x59f   : > { %v2944_v9 = vpop.f32.mrb[11].mxu0  ;;  %v897_v10 = vsel %vm3539_vm7, %v896_v5, -1e+30  ;;  %v674_v5 = vld [vmem:[%s4007_s6 + $0x10] sm:$0xff] }
 0x5a0   : > { %v898_v11 = vsel %vm681_vm3, %v897_v10, -inf  ;;  %v1120_v6 = vpack.c.bf16 %v674_v5, %v674_v5 }
 0x5a1   : > { %899 = vmax.xlane.f32.xlu1 %v898_v11 }
 0x5a2   : > { %v1125_v7 = vsel %vm747_vm2, %v1120_v6, 0 }
 0x5b2   : > { %910 = vrot.lane.b32.xlu1 %v3521_v25, %s4020_s30  ;;  %s4024_s30 = smov 72  }
 0x5b6   : > { %1009 = vrot.lane.b32.xlu1 %v3521_v25, %s4023_s18  ;;  %s4025_s18 = smov 40  }
 0x5ba   : > { %1007 = vrot.lane.b32.xlu1 %v3521_v25, %s4021_s19  ;;  %s4026_s19 = smov 104  }
 0x62e   : > { %v900_v12 = vpop.xlane.xlu1 %899 }
 0x62f   : > { %v901_v13 = vsub.f32 %v897_v10, %v900_v12 }
 0x631   : > { %v902_v14 = vmul.f32 1.442695, %v901_v13 }
 0x632   : > { %v911_v15 = vpop.permute.xlu1 %910 }
 0x633   : > { %3224 = vpow2.f32 %v902_v14  ;;  %v916_v16 = vsel %vm747_vm2, %v911_v15, 0 }
 0x634   : > { %2946 = vmatpush3.bf16.msra.mxu1 %v916_v16 }
 0x635   : > { %2957 = vmatprep.subr.bf16.mxu1 %v3328_v8 }
 0x636   : > { %v1010_v30 = vpop.permute.xlu1 %1009 }
 0x637   : > { %v1015_v32 = vsel %vm681_vm3, %v1010_v30, 0 }
 0x63a   : > { %v1008_v33 = vpop.permute.xlu1 %1007 }
 0x63d   : > { %v3225_v17 = vpop.eup %3224 }
 0x63e   : > { %v904_v18 = vsel %vm681_vm3, %v3225_v17, 0.0 }
 0x63f   : > { %905 = vadd.xlane.f32.xlu0 %v904_v18 }
 0x655   : > { %1071 = vrot.lane.b32.xlu0 %v3521_v25, %s4022_s29  ;;  %s4048_s29 = smov 64  }
 0x66a   : > { %v833_v22 = vpop.f32.mrb[4].mxu1 }
 0x66b   : > { %v2937_v23 = vpop.f32.mrb[5].mxu1  ;;  %v845_v55 = vadd.f32 %v2728_v54, %v833_v22 }
 0x66c   : > { %v836_v24 = vpop.f32.mrb[6].mxu1 }
 0x66d   : > { %v2938_v26 = vpop.f32.mrb[7].mxu1 }
 0x6cc   : > { %v906_v27 = vpop.xlane.xlu0 %905 }
 0x6cd   : > { %3226 = vrcp.f32 %v906_v27 }
 0x6d0   : > { %v1072_v34 = vpop.permute.xlu0 %1071 }
 0x6d1   : > { %v1077_v40 = vsel %vm747_vm2, %v1072_v34, 0 }
 0x6d7   : > { %v3227_v28 = vpop.eup %3226 }
 0x6d8   : > { %v908_v29 = vmul.f32 %v3227_v28, %v3225_v17 }
 0x6da   : > { %v909_v31 = vpack.c.bf16 %v908_v29, %v908_v29  ;;  %v675_v29 = vld [vmem:[%s4007_s6 + $0x18] sm:$0xff] }
 0x6db   : > { %v1281_v30 = vpack.c.bf16 %v675_v29, %v675_v29 }
 0x6dc   : > { %2948 = vmatmul.mubr.msk.bf16.vlgmr.msra.gmra.mrb[8].mxu1 %vm681_vm3, %v909_v31 }
 0x6dd   : > { %2958 = vmatpush3.bf16.xpose.msra.mxu1 %v1015_v32  ;;  %2959 = vmatprep.mubr.msk.bf16.mxu1 %vm3329_vm1, %v3328_v8 }
 0x6de   : > { %2969 = vmatprep.subr.bf16.mxu1 %v3328_v8 }
 0x6e4   : > { %2960 = vmatmul.mubr.msk.bf16.vlgmr.msra.gmra.mrb[12].mxu1 %vm681_vm3, %v1008_v33 }
 0x6e5   : > { %2971 = vmatprep.mubr.msk.bf16.mxu1 %vm3329_vm1, %v3328_v8  ;;  %2970 = vmatpush3.bf16.msra.mxu1 %v1125_v7  ;;  %v3199_v7 = vld [vmem:[%s4013_s12 + $0x8] sm:$0xff]  }
 0x6e6   : > { %2981 = vmatprep.subr.bf16.mxu1 %v3328_v8 }
 0x7af   : > { %v952_v35 = vpop.f32.mrb[8].mxu1 }
 0x7b0   : > { %v958_v36 = vpack.c.bf16 %v952_v35, %v952_v35  ;;  %v2949_v37 = vpop.f32.mrb[9].mxu1 }
 0x7b1   : > { %v955_v38 = vpop.f32.mrb[10].mxu1 }
 0x7b2   : > { %v2950_v41 = vpop.f32.mrb[11].mxu1  ;;  %2954 = vmatmul.mubr.msk.bf16.vlgmr.msra.gmra.mrb[12].mxu0 %vm681_vm3, %v958_v36 }
 0x7b3   : > { %2964 = vmatpush3.bf16.msra.mxu0 %v1077_v40  ;;  %2965 = vmatprep.mubr.msk.bf16.mxu0 %vm3329_vm1, %v3328_v8 }
 0x7b4   : > { %2975 = vmatprep.subr.bf16.mxu0 %v3328_v8 }
 0x7b7   : > { %v1051_v42 = vpop.f32.mrb[12].mxu1 }
 0x7b8   : > { %v1057_v43 = vmul.f32 0.35355338, %v1051_v42  ;;  %v2961_v44 = vpop.f32.mrb[13].mxu1 }
 0x7b9   : > { %v1054_v45 = vpop.f32.mrb[14].mxu1 }
 0x7ba   : > { %v2962_v46 = vpop.f32.mrb[15].mxu1  ;;  %v1058_v47 = vsel %vm3539_vm7, %v1057_v43, -1e+30 }
 0x7bb   : > { %v1059_v48 = vsel %vm681_vm3, %v1058_v47, -inf }
 0x7bc   : > { %1060 = vmax.xlane.f32.xlu1 %v1059_v48 }
 0x849   : > { %v1061_v49 = vpop.xlane.xlu1 %1060 }
 0x84a   : > { %v1062_v50 = vsub.f32 %v1058_v47, %v1061_v49 }
 0x84c   : > { %v1063_v51 = vmul.f32 1.442695, %v1062_v50 }
 0x84e   : > { %3228 = vpow2.f32 %v1063_v51 }
 0x858   : > { %v3229_v52 = vpop.eup %3228 }
 0x859   : > { %v1065_v53 = vsel %vm681_vm3, %v3229_v52, 0.0 }
 0x85a   : > { %1066 = vadd.xlane.f32.xlu0 %v1065_v53 }
 0x870   : > { %1170 = vrot.lane.b32.xlu0 %v3521_v25, %s4024_s30  ;;  %s4051_s30 = smov 56  }
 0x874   : > { %1168 = vrot.lane.b32.xlu0 %v3521_v25, %s4026_s19  ;;  %s2827_s19 = sshll.u32 %s3454_s28, 7  ;;  %s3342_s28 = smov [#allocation2]  }
 0x885   : > { %v1000_v56 = vpop.f32.mrb[12].mxu0 }
 0x886   : > { %v1006_v57 = vadd.f32 %v1000_v56, %v845_v55  ;;  %v2955_v58 = vpop.f32.mrb[13].mxu0 }
 0x887   : > { %v1003_v59 = vpop.f32.mrb[14].mxu0  ;;  %v3196_v58 = vld [vmem:[%s4011_s10] sm:$0xff]  }
 0x888   : > { %v2956_v60 = vpop.f32.mrb[15].mxu0  ;;  %v3198_v59 = vld [vmem:[%s4013_s12] sm:$0xff]  }
 0x8e7   : > { %v1067_v61 = vpop.xlane.xlu0 %1066 }
 0x8e8   : > { %3230 = vrcp.f32 %v1067_v61 }
 0x8eb   : > { %v1171_v1 = vpop.permute.xlu0 %1170 }
 0x8ec   : > { %v1176_v3 = vsel %vm681_vm3, %v1171_v1, 0  ;;  %v2738_v1 = vld [vmem:[%s4009_s8] ss:$0 sm:$0xff] }
 0x8ef   : > { %v1169_v4 = vpop.permute.xlu0 %1168 }
 0x8f2   : > { %v3231_v62 = vpop.eup %3230 }
 0x8f3   : > { %v1069_v63 = vmul.f32 %v3231_v62, %v3229_v52 }
 0x8f5   : > { %v1070_v2 = vpack.c.bf16 %v1069_v63, %v1069_v63 }
 0x8f7   : > { %2966 = vmatmul.mubr.msk.bf16.vlgmr.msra.gmra.mrb[16].mxu0 %vm681_vm3, %v1070_v2 }
 0x8f8   : > { %2976 = vmatpush3.bf16.xpose.msra.mxu0 %v1176_v3  ;;  %2977 = vmatprep.mubr.msk.bf16.mxu0 %vm3329_vm1, %v3328_v8  ;;  %v2739_v3 = vld [vmem:[%s4010_s9] ss:$0 sm:$0xff] }
 0x8f9   : > { %2987 = vmatprep.subr.bf16.mxu0 %v3328_v8 }
 0x8ff   : > { %2978 = vmatmul.mubr.msk.bf16.vlgmr.msra.gmra.mrb[20].mxu0 %vm681_vm3, %v1169_v4 }
 0x900   : > { %2989 = vmatprep.mubr.msk.bf16.mxu0 %vm3329_vm1, %v3328_v8 }
 0x9ca   : > { %v1113_v9 = vpop.f32.mrb[16].mxu0 }
 0x9cb   : > { %v1119_v10 = vpack.c.bf16 %v1113_v9, %v1113_v9  ;;  %v2967_v11 = vpop.f32.mrb[17].mxu0  ;;  %v3200_v9 = vld [vmem:[%s4013_s12 + $0x10] sm:$0xff]  }
 0x9cc   : > { %v1116_v12 = vpop.f32.mrb[18].mxu0  ;;  %v3202_v11 = vld [vmem:[%s4013_s12 + $0x20] sm:$0xff]  }
 0x9cd   : > { %v2968_v13 = vpop.f32.mrb[19].mxu0  ;;  %2972 = vmatmul.mubr.msk.bf16.vlgmr.msra.gmra.mrb[16].mxu1 %vm681_vm3, %v1119_v10  ;;  %v3201_v10 = vld [vmem:[%s4013_s12 + $0x18] sm:$0xff]   ;;  %v3203_v12 = vld [vmem:[%s4013_s12 + $0x28] sm:$0xff]  }
 0x9ce   : > { %2983 = vmatprep.mubr.msk.bf16.mxu1 %vm3329_vm1, %v3328_v8  ;;  %v3204_v13 = vld [vmem:[%s4013_s12 + $0x30] sm:$0xff]  }
 0x9d2   : > { %v1212_v14 = vpop.f32.mrb[20].mxu0 }
 0x9d3   : > { %v1218_v15 = vmul.f32 0.35355338, %v1212_v14  ;;  %v2979_v16 = vpop.f32.mrb[21].mxu0  ;;  %v3205_v14 = vld [vmem:[%s4013_s12 + $0x38] sm:$0xff]  }
 0x9d4   : > { %v1215_v17 = vpop.f32.mrb[22].mxu0 }
 0x9d5   : > { %v2980_v18 = vpop.f32.mrb[23].mxu0  ;;  %v1219_v19 = vsel %vm3539_vm7, %v1218_v15, -1e+30  ;;  %v2740_v15 = vld [vmem:[%s4012_s11] ss:$0 sm:$0xff] }
 0x9d6   : > { %v1220_v20 = vsel %vm681_vm3, %v1219_v19, -inf }
 0x9d7   : > { %1221 = vmax.xlane.f32.xlu1 %v1220_v20 }
 0x9e8   : > { %1232 = vrot.lane.b32.xlu1 %v3521_v25, %s4025_s18  ;;  %v1286_v25 = vsel %vm747_vm2, %v1281_v30, 0  ;;  %s4045_s18 = smov 88  }
 0x9e9   : > { %2988 = vmatpush3.bf16.msra.mxu0 %v1286_v25 }
 0x9ea   : > { %3001 = vmatprep.subr.bf16.mxu0 %v3328_v8 }
 0xa64   : > { %v1222_v21 = vpop.xlane.xlu1 %1221 }
 0xa65   : > { %v1223_v22 = vsub.f32 %v1219_v19, %v1222_v21 }
 0xa67   : > { %v1224_v23 = vmul.f32 1.442695, %v1223_v22 }
 0xa68   : > { %v1233_v24 = vpop.permute.xlu1 %1232 }
 0xa69   : > { %3232 = vpow2.f32 %v1224_v23  ;;  %v1238_v26 = vsel %vm747_vm2, %v1233_v24, 0 }
 0xa6a   : > { %2982 = vmatpush3.bf16.msra.mxu1 %v1238_v26 }
 0xa6b   : > { %2993 = vmatprep.subr.bf16.mxu1 %v3328_v8 }
 0xa73   : > { %v3233_v27 = vpop.eup %3232 }
 0xa74   : > { %v1226_v28 = vsel %vm681_vm3, %v3233_v27, 0.0 }
 0xa75   : > { %1227 = vadd.xlane.f32.xlu0 %v1226_v28 }
 0xaa0   : > { %v1161_v31 = vpop.f32.mrb[16].mxu1 }
 0xaa1   : > { %v1167_v32 = vadd.f32 %v1161_v31, %v1006_v57  ;;  %v2973_v33 = vpop.f32.mrb[17].mxu1 }
 0xaa2   : > { %v1164_v34 = vpop.f32.mrb[18].mxu1 }
 0xaa3   : > { %v2974_v35 = vpop.f32.mrb[19].mxu1 }
 0xb02   : > { %v1228_v36 = vpop.xlane.xlu0 %1227 }
 0xb03   : > { %3234 = vrcp.f32 %v1228_v36 }
 0xb0d   : > { %v3235_v37 = vpop.eup %3234 }
 0xb0e   : > { %v1230_v38 = vmul.f32 %v3235_v37, %v3233_v27 }
 0xb10   : > { %v1231_v40 = vpack.c.bf16 %v1230_v38, %v1230_v38 }
 0xb12   : > { %2984 = vmatmul.mubr.msk.bf16.vlgmr.msra.gmra.mrb[20].mxu1 %vm681_vm3, %v1231_v40 }
 0xb13   : > { %2997 = vmatprep.mubr.msk.bf16.mxu1 %vm3329_vm1, %v3328_v8  ;;  %2994 = vmatpush3.bf16.msra.mxu1 %v3196_v58 }
 0xb14   : > { %2995 = vmatprep.subr.bf16.mxu1 %v3328_v8 }
 0xbe5   : > { %v1274_v41 = vpop.f32.mrb[20].mxu1 }
 0xbe6   : > { %v1280_v42 = vpack.c.bf16 %v1274_v41, %v1274_v41  ;;  %v2985_v43 = vpop.f32.mrb[21].mxu1 }
 0xbe7   : > { %v1277_v44 = vpop.f32.mrb[22].mxu1 }
 0xbe8   : > { %v2986_v45 = vpop.f32.mrb[23].mxu1  ;;  %2990 = vmatmul.mubr.msk.bf16.vlgmr.msra.gmra.mrb[24].mxu0 %vm681_vm3, %v1280_v42 }
 0xbe9   : > { %3017 = vmatprep.mubr.msk.bf16.mxu0 %vm3329_vm1, %v3328_v8  ;;  %3002 = vmatpush3.bf16.msra.mxu0 %v3198_v59  ;;  %v3206_v45 = vld [vmem:[%s4005_s4 + $0x10] sm:$0xff]  }
 0xbea   : > { %3003 = vmatprep.subr.bf16.mxu0 %v3328_v8 }
 0xbed   : > { %3004 = vmatpush3.bf16.msra.mxu0 %v3199_v7 }
 0xbee   : > { %3005 = vmatprep.subr.bf16.mxu0 %v3328_v8 }
 0xbf1   : > { %3006 = vmatpush3.bf16.msra.mxu0 %v3200_v9 }
 0xbf2   : > { %3007 = vmatprep.subr.bf16.mxu0 %v3328_v8 }
 0xbf5   : > { %3008 = vmatpush3.bf16.msra.mxu0 %v3201_v10 }
 0xbf6   : > { %3009 = vmatprep.subr.bf16.mxu0 %v3328_v8 }
 0xbf9   : > { %3010 = vmatpush3.bf16.msra.mxu0 %v3202_v11 }
 0xbfa   : > { %3011 = vmatprep.subr.bf16.mxu0 %v3328_v8 }
 0xbfd   : > { %3012 = vmatpush3.bf16.msra.mxu0 %v3203_v12 }
 0xbfe   : > { %3013 = vmatprep.subr.bf16.mxu0 %v3328_v8 }
 0xc01   : > { %3014 = vmatpush3.bf16.msra.mxu0 %v3204_v13 }
 0xc02   : > { %3015 = vmatprep.subr.bf16.mxu0 %v3328_v8 }
 0xc05   : > { %3016 = vmatpush3.bf16.msra.mxu0 %v3205_v14 }
 0xc06   : > { %3047 = vmatprep.subr.bf16.mxu0 %v3328_v8 }
 0xcbb   : > { %v1322_v46 = vpop.f32.mrb[24].mxu0 }
 0xcbc   : > { %v1328_v47 = vadd.f32 %v1322_v46, %v1167_v32  ;;  %v2991_v48 = vpop.f32.mrb[25].mxu0  ;;  %v2752_v32 = vld [vmem:[%s4014_s13] ss:$0 sm:$0xff]  ;;  %v3207_v46 = vld [vmem:[%s4005_s4 + $0x18] sm:$0xff]  }
 0xcbd   : > { %v1325_v49 = vpop.f32.mrb[26].mxu0 }
 0xcbe   : > { %v3646_v50 = vadd.f32 %v1328_v47, %v3489_v0  ;;  %v2992_v51 = vpop.f32.mrb[27].mxu0  ;;  %v3197_v0 = vld [vmem:[%s4011_s10 + $0x8] sm:$0xff]  }
 0xcbf   : > { %2996 = vmatpush3.bf16.msra.mxu1 %v3197_v0  ;;  %v2755_v51 = vld [vmem:[%s4040_s2 + $0x1] ss:$0 sm:$0xff] }
 0xcc0   : > { %v1332_v52 = vsel %vm576_vm0, %v3646_v50, 0.0  ;;  %3021 = vmatprep.subr.bf16.mxu1 %v3328_v8 }
 0xcc1   : > { %1333 = vadd.xlane.f32.xlu1 %v1332_v52 }
 0xd4e   : > { %v1334_v53 = vpop.xlane.xlu1 %1333 }
 0xd4f   : > { %v1335_v54 = vmul.f32 0.03125, %v1334_v53  ;;  %v2756_v53 = vld [vmem:[%s4041_s3 + $0x1] ss:$0 sm:$0xff] }
 0xd51   : > { %v1336_v55 = vsub.f32 %v3646_v50, %v1335_v54 }
 0xd53   : > { %v1337_v56 = vmul.f32 %v1336_v55, %v1336_v55 }
 0xd55   : > { %v1338_v57 = vsel %vm576_vm0, %v1337_v56, 0.0 }
 0xd56   : > { %1339 = vadd.xlane.f32.xlu0 %v1338_v57  ;;  %v2762_v57 = vld [vmem:[%s4006_s5 + $0x1] ss:$0 sm:$0xff] }
 0xde3   : > { %v1340_v60 = vpop.xlane.xlu0 %1339 }
 0xde4   : > { %v1341_v61 = vmul.f32 0.03125, %v1340_v60 }
 0xde6   : > { %v1342_v62 = vadd.f32 1e-05, %v1341_v61 }
 0xde8   : > { %3236 = vrsqrt.f32 %v1342_v62 }
 0xdf2   : > { %v3237_v63 = vpop.eup %3236 }
 0xdf3   : > { %v1344_v2 = vmul.f32 %v3237_v63, %v1336_v55 }
 0xdf5   : > { %v1351_v4 = vmul.f32 %v2738_v1, %v1344_v2 }
 0xdf7   : > { %v1358_v5 = vadd.f32 %v2739_v3, %v1351_v4 }
 0xdf9   : > { %v1363_v6 = vpack.c.bf16 %v1358_v5, %v1358_v5 }
 0xdfb   : > { %2998 = vmatmul.mubr.msk.bf16.vlgmr.msra.gmra.mrb[24].mxu1 %vm576_vm0, %v1363_v6 }
 0xdfc   : > { %3025 = vmatprep.mubr.msk.bf16.mxu1 %vm3329_vm1, %v3328_v8  ;;  %3022 = vmatpush3.bf16.msra.mxu1 %v3206_v45 }
 0xdfd   : > { %3023 = vmatprep.subr.bf16.mxu1 %v3328_v8 }
 0xe00   : > { %3024 = vmatpush3.bf16.msra.mxu1 %v3207_v46 }
 0xe01   : > { %3029 = vmatprep.subr.bf16.mxu1 %v3328_v8 }
 0xece   : > { %v1420_v16 = vpop.f32.mrb[24].mxu1 }
 0xecf   : > { %v1421_v17 = vadd.f32 %v2740_v15, %v1420_v16  ;;  %v2999_v18 = vpop.f32.mrb[25].mxu1 }
 0xed0   : > { %v1423_v19 = vpop.f32.mrb[26].mxu1 }
 0xed1   : > { %v1427_v20 = vmul.f32 0.044715, %v1421_v17  ;;  %v3000_v21 = vpop.f32.mrb[27].mxu1  ;;  %v1426_v28 = vmul.f32 0.5, %v1421_v17 }
 0xed3   : > { %v1428_v22 = vmul.f32 %v1427_v20, %v1421_v17 }
 0xed5   : > { %v1429_v23 = vmul.f32 %v1428_v22, %v1421_v17 }
 0xed7   : > { %v1430_v24 = vadd.f32 %v1429_v23, %v1421_v17 }
 0xed9   : > { %v1431_v26 = vmul.f32 0.7978846, %v1430_v24 }
 0xedb   : > { %3238 = vtanh.f32 %v1431_v26 }
 0xee5   : > { %v3239_v27 = vpop.eup %3238 }
 0xee6   : > { %v1433_v29 = vadd.f32 1.0, %v3239_v27 }
 0xee8   : > { %v1434_v30 = vmul.f32 %v1433_v29, %v1426_v28 }
 0xeea   : > { %v1451_v25 = vpack.c.bf16 %v1434_v30, %v1434_v30 }
 0xeec   : > { %3018 = vmatmul.mubr.bf16.vlgmr.msra.gmra.mrb[28].mxu0 %v1451_v25 }
 0xeed   : > { %3049 = vmatprep.mubr.msk.bf16.mxu0 %vm3329_vm1, %v3328_v8 }
 0xfbf   : > { %v1534_v31 = vpop.f32.mrb[28].mxu0 }
 0xfc0   : > { %v1540_v33 = vadd.f32 %v1534_v31, %v3646_v50  ;;  %v3019_v34 = vpop.f32.mrb[29].mxu0 }
 0xfc1   : > { %v1537_v35 = vpop.f32.mrb[30].mxu0 }
 0xfc2   : > { %v3710_v36 = vadd.f32 %v2752_v32, %v1540_v33  ;;  %v3020_v37 = vpop.f32.mrb[31].mxu0 }
 0xfc3   : > { %v2766_v37 = vld [vmem:[%s4007_s6 + $0x20] sm:$0xff] }
 0xfc4   : > { %v1553_v38 = vsel %vm576_vm0, %v3710_v36, 0.0 }
 0xfc5   : > { %1554 = vadd.xlane.f32.xlu0 %v1553_v38  ;;  %v1769_v38 = vpack.c.bf16 %v2766_v37, %v2766_v37 }
0x1052   : > { %v1555_v40 = vpop.xlane.xlu0 %1554 }
0x1053   : > { %v1556_v41 = vmul.f32 0.03125, %v1555_v40  ;;  %v1774_v40 = vsel %vm747_vm2, %v1769_v38, 0 }
0x1055   : > { %v1557_v42 = vsub.f32 %v3710_v36, %v1556_v41 }
0x1057   : > { %v1558_v43 = vmul.f32 %v1557_v42, %v1557_v42 }
0x1059   : > { %v1559_v44 = vsel %vm576_vm0, %v1558_v43, 0.0 }
0x105a   : > { %1560 = vadd.xlane.f32.xlu0 %v1559_v44 }
0x10e7   : > { %v1561_v47 = vpop.xlane.xlu0 %1560 }
0x10e8   : > { %v1562_v48 = vmul.f32 0.03125, %v1561_v47 }
0x10ea   : > { %v1563_v49 = vadd.f32 1e-05, %v1562_v48 }
0x10ec   : > { %3240 = vrsqrt.f32 %v1563_v49 }
0x10f6   : > { %v3241_v50 = vpop.eup %3240 }
0x10f7   : > { %v1565_v52 = vmul.f32 %v3241_v50, %v1557_v42 }
0x10f9   : > { %v1572_v54 = vmul.f32 %v2755_v51, %v1565_v52 }
0x10fb   : > { %v1579_v55 = vadd.f32 %v2756_v53, %v1572_v54 }
0x10fd   : > { %v1585_v56 = vpack.c.bf16 %v1579_v55, %v1579_v55  ;;  %v2767_v55 = vld [vmem:[%s4007_s6 + $0x28] sm:$0xff] }
0x10ff   : > { %3026 = vmatmul.mubr.msk.bf16.vlgmr.msra.gmra.mrb[28].mxu1 %vm576_vm0, %v1585_v56  ;;  %v1936_v56 = vpack.c.bf16 %v2767_v55, %v2767_v55  ;;  %v2769_v55 = vld [vmem:[%s4007_s6 + $0x38] sm:$0xff] }
0x1100   : > { %3031 = vmatprep.mubr.msk.bf16.mxu1 %vm3329_vm1, %v3328_v8  ;;  %v2258_v39 = vpack.c.bf16 %v2769_v55, %v2769_v55 }
0x11d2   : > { %v1643_v58 = vpop.f32.mrb[28].mxu1 }
0x11d3   : > { %v1644_v0 = vadd.f32 %v2762_v57, %v1643_v58  ;;  %v3027_v59 = vpop.f32.mrb[29].mxu1  ;;  %v1941_v57 = vsel %vm747_vm2, %v1936_v56, 0  ;;  %v2263_v56 = vsel %vm747_vm2, %v2258_v39, 0 }
0x11d4   : > { %v1646_v60 = vpop.f32.mrb[30].mxu1 }
0x11d5   : > { %v3736_v61 = vpack.c.bf16 %v1644_v0, %v1644_v0  ;;  %v3028_v62 = vpop.f32.mrb[31].mxu1 }
0x11d7   : > { %1825 = vrot.lane.b32.xlu1 %v3736_v61, %s4045_s18  ;;  %1658 = vrot.lane.b32.xlu0 %v3736_v61, %s4046_s26 }
0x11db   : > { %1823 = vrot.lane.b32.xlu0 %v3736_v61, %s4047_s21  ;;  %s4055_s21 = smov 40  }
0x1249   : > { %v1826_v63 = vpop.permute.xlu1 %1825  ;;  %v1659_v1 = vpop.permute.xlu0 %1658 }
0x124a   : > { %v1831_v2 = vsel %vm681_vm3, %v1826_v63, 0  ;;  %v1664_v3 = vsel %vm681_vm3, %v1659_v1, 0 }
0x124b   : > { %3030 = vmatpush3.bf16.xpose.msra.mxu1 %v1664_v3  ;;  %3048 = vmatpush3.bf16.xpose.msra.mxu0 %v1831_v2 }
0x124c   : > { %3035 = vmatprep.subr.bf16.mxu1 %v3328_v8  ;;  %3059 = vmatprep.subr.bf16.mxu0 %v3328_v8 }
0x124d   : > { %v1824_v4 = vpop.permute.xlu0 %1823 }
0x1252   : > { %3032 = vmatmul.mubr.msk.bf16.vlgmr.msra.gmra.mrb[32].mxu1 %vm681_vm3, %v3736_v61  ;;  %3050 = vmatmul.mubr.msk.bf16.vlgmr.msra.gmra.mrb[32].mxu0 %vm681_vm3, %v1824_v4 }
0x1253   : > { %3037 = vmatprep.mubr.msk.bf16.mxu1 %vm3329_vm1, %v3328_v8  ;;  %3061 = vmatprep.mubr.msk.bf16.mxu0 %vm3329_vm1, %v3328_v8 }
0x1254   : > { %3060 = vmatpush3.bf16.msra.mxu0 %v1941_v57 }
0x1255   : > { %3071 = vmatprep.subr.bf16.mxu0 %v3328_v8 }
0x1325   : > { %v1700_v5 = vpop.f32.mrb[32].mxu1  ;;  %v1867_v6 = vpop.f32.mrb[32].mxu0 }
0x1326   : > { %v1706_v7 = vmul.f32 0.35355338, %v1700_v5  ;;  %v3033_v9 = vpop.f32.mrb[33].mxu1  ;;  %v3051_v10 = vpop.f32.mrb[33].mxu0  ;;  %v1873_v22 = vmul.f32 0.35355338, %v1867_v6 }
0x1327   : > { %v1703_v11 = vpop.f32.mrb[34].mxu1  ;;  %v1870_v12 = vpop.f32.mrb[34].mxu0 }
0x1328   : > { %v3034_v13 = vpop.f32.mrb[35].mxu1  ;;  %v3052_v14 = vpop.f32.mrb[35].mxu0  ;;  %v1707_v15 = vsel %vm3539_vm7, %v1706_v7, -1e+30  ;;  %v1874_v26 = vsel %vm3539_vm7, %v1873_v22, -1e+30 }
0x1329   : > { %v1708_v16 = vsel %vm681_vm3, %v1707_v15, -inf  ;;  %v1875_v27 = vsel %vm681_vm3, %v1874_v26, -inf }
0x132a   : > { %1709 = vmax.xlane.f32.xlu0 %v1708_v16 }
0x1340   : > { %1720 = vrot.lane.b32.xlu0 %v3736_v61, %s4048_s29  ;;  %s4052_s29 = smov 48  }
0x1344   : > { %1986 = vrot.lane.b32.xlu0 %v3736_v61, %s4049_s23  ;;  %s4053_s23 = smov 104  }
0x1348   : > { %1984 = vrot.lane.b32.xlu0 %v3736_v61, %s4050_s22  ;;  %s4054_s22 = smov 72  }
0x13b7   : > { %v1710_v17 = vpop.xlane.xlu0 %1709 }
0x13b8   : > { %v1711_v18 = vsub.f32 %v1707_v15, %v1710_v17 }
0x13ba   : > { %v1712_v19 = vmul.f32 1.442695, %v1711_v18 }
0x13bb   : > { %v1721_v20 = vpop.permute.xlu0 %1720 }
0x13bc   : > { %3242 = vpow2.f32 %v1712_v19  ;;  %v1726_v21 = vsel %vm747_vm2, %v1721_v20, 0  ;;  %v2774_v19 = vld [vmem:[%s4008_s7 + $0x1] ss:$0 sm:$0xff] }
0x13bd   : > { %3036 = vmatpush3.bf16.msra.mxu1 %v1726_v21 }
0x13be   : > { %3041 = vmatprep.subr.bf16.mxu1 %v3328_v8 }
0x13bf   : > { %v1987_v51 = vpop.permute.xlu0 %1986 }
0x13c0   : > { %v1992_v53 = vsel %vm681_vm3, %v1987_v51, 0 }
0x13c3   : > { %v1985_v54 = vpop.permute.xlu0 %1984 }
0x13c6   : > { %v3243_v23 = vpop.eup %3242 }
0x13c7   : > { %v1714_v24 = vsel %vm681_vm3, %v3243_v23, 0.0 }
0x13c8   : > { %1715 = vadd.xlane.f32.xlu1 %v1714_v24 }
0x13cc   : > { %1876 = vmax.xlane.f32.xlu1 %v1875_v27 }
0x1455   : > { %v1716_v28 = vpop.xlane.xlu1 %1715 }
0x1456   : > { %3244 = vrcp.f32 %v1716_v28 }
0x1459   : > { %v1877_v29 = vpop.xlane.xlu1 %1876 }
0x145a   : > { %v1878_v30 = vsub.f32 %v1874_v26, %v1877_v29 }
0x145c   : > { %v1879_v25 = vmul.f32 1.442695, %v1878_v30 }
0x145e   : > { %3246 = vpow2.f32 %v1879_v25 }
0x1460   : > { %v3245_v31 = vpop.eup %3244 }
0x1461   : > { %v1718_v32 = vmul.f32 %v3245_v31, %v3243_v23 }
0x1463   : > { %v1719_v33 = vpack.c.bf16 %v1718_v32, %v1718_v32 }
0x1465   : > { %3038 = vmatmul.mubr.msk.bf16.vlgmr.msra.gmra.mrb[36].mxu1 %vm681_vm3, %v1719_v33  ;;  %v2768_v33 = vld [vmem:[%s4007_s6 + $0x30] sm:$0xff] }
0x1466   : > { %3043 = vmatprep.mubr.msk.bf16.mxu1 %vm3329_vm1, %v3328_v8  ;;  %3042 = vmatpush3.bf16.msra.mxu1 %v1774_v40 }
0x1467   : > { %3053 = vmatprep.subr.bf16.mxu1 %v3328_v8 }
0x1468   : > { %v3247_v34 = vpop.eup %3246 }
0x1469   : > { %v1881_v35 = vsel %vm681_vm3, %v3247_v34, 0.0 }
0x146a   : > { %1882 = vadd.xlane.f32.xlu1 %v1881_v35 }
0x147b   : > { %1887 = vrot.lane.b32.xlu1 %v3736_v61, %s4051_s30 }
0x14f7   : > { %v1883_v41 = vpop.xlane.xlu1 %1882 }
0x14f8   : > { %3248 = vrcp.f32 %v1883_v41 }
0x14fb   : > { %v1888_v42 = vpop.permute.xlu1 %1887 }
0x14fc   : > { %v1893_v48 = vsel %vm747_vm2, %v1888_v42, 0 }
0x1502   : > { %v3249_v46 = vpop.eup %3248 }
0x1503   : > { %v1885_v50 = vmul.f32 %v3249_v46, %v3247_v34  ;;  %v2097_v34 = vpack.c.bf16 %v2768_v33, %v2768_v33 }
0x1505   : > { %v1886_v52 = vpack.c.bf16 %v1885_v50, %v1885_v50  ;;  %v2102_v35 = vsel %vm747_vm2, %v2097_v34, 0  ;;  %v3211_v34 = vld [vmem:[%s4013_s12 + $0x48] sm:$0xff]  }
0x1538   : > { %v1762_v43 = vpop.f32.mrb[36].mxu1 }
0x1539   : > { %v1768_v44 = vpack.c.bf16 %v1762_v43, %v1762_v43  ;;  %v3039_v45 = vpop.f32.mrb[37].mxu1 }
0x153a   : > { %v1765_v47 = vpop.f32.mrb[38].mxu1 }
0x153b   : > { %v3040_v49 = vpop.f32.mrb[39].mxu1  ;;  %3044 = vmatmul.mubr.msk.bf16.vlgmr.msra.gmra.mrb[40].mxu1 %vm681_vm3, %v1768_v44 }
0x153c   : > { %3054 = vmatpush3.bf16.msra.mxu1 %v1893_v48  ;;  %3055 = vmatprep.mubr.msk.bf16.mxu1 %vm3329_vm1, %v3328_v8 }
0x153d   : > { %3065 = vmatprep.subr.bf16.mxu1 %v3328_v8 }
0x1543   : > { %3056 = vmatmul.mubr.msk.bf16.vlgmr.msra.gmra.mrb[44].mxu1 %vm681_vm3, %v1886_v52 }
0x1544   : > { %3067 = vmatprep.mubr.msk.bf16.mxu1 %vm3329_vm1, %v3328_v8 }
0x1545   : > { %3066 = vmatpush3.bf16.xpose.msra.mxu1 %v1992_v53 }
0x1546   : > { %3077 = vmatprep.subr.bf16.mxu1 %v3328_v8 }
0x154c   : > { %3068 = vmatmul.mubr.msk.bf16.vlgmr.msra.gmra.mrb[48].mxu1 %vm681_vm3, %v1985_v54 }
0x154d   : > { %3079 = vmatprep.mubr.msk.bf16.mxu1 %vm3329_vm1, %v3328_v8  ;;  %3078 = vmatpush3.bf16.msra.mxu1 %v2102_v35  ;;  %v3212_v35 = vld [vmem:[%s4013_s12 + $0x50] sm:$0xff]  }
0x154e   : > { %3089 = vmatprep.subr.bf16.mxu1 %v3328_v8 }
0x160e   : > { %v1810_v58 = vpop.f32.mrb[40].mxu1 }
0x160f   : > { %v3045_v0 = vpop.f32.mrb[41].mxu1  ;;  %v1822_v20 = vadd.f32 %v2774_v19, %v1810_v58 }
0x1610   : > { %v1813_v59 = vpop.f32.mrb[42].mxu1 }
0x1611   : > { %v3046_v60 = vpop.f32.mrb[43].mxu1 }
0x1616   : > { %v1929_v62 = vpop.f32.mrb[44].mxu1 }
0x1617   : > { %v1935_v63 = vpack.c.bf16 %v1929_v62, %v1929_v62  ;;  %v3057_v1 = vpop.f32.mrb[45].mxu1 }
0x1618   : > { %v1932_v2 = vpop.f32.mrb[46].mxu1 }
0x1619   : > { %v3058_v3 = vpop.f32.mrb[47].mxu1  ;;  %3062 = vmatmul.mubr.msk.bf16.vlgmr.msra.gmra.mrb[36].mxu0 %vm681_vm3, %v1935_v63 }
0x161a   : > { %3073 = vmatprep.mubr.msk.bf16.mxu0 %vm3329_vm1, %v3328_v8 }
0x161f   : > { %v2028_v4 = vpop.f32.mrb[48].mxu1 }
0x1620   : > { %v2034_v5 = vmul.f32 0.35355338, %v2028_v4  ;;  %v3069_v6 = vpop.f32.mrb[49].mxu1 }
0x1621   : > { %v2031_v7 = vpop.f32.mrb[50].mxu1 }
0x1622   : > { %v3070_v9 = vpop.f32.mrb[51].mxu1  ;;  %v2035_v10 = vsel %vm3539_vm7, %v2034_v5, -1e+30 }
0x1623   : > { %v2036_v11 = vsel %vm681_vm3, %v2035_v10, -inf }
0x1624   : > { %2037 = vmax.xlane.f32.xlu0 %v2036_v11 }
0x163a   : > { %2048 = vrot.lane.b32.xlu0 %v3736_v61, %s4052_s29 }
0x163e   : > { %2145 = vrot.lane.b32.xlu0 %v3736_v61, %s4053_s23 }
0x16b1   : > { %v2038_v12 = vpop.xlane.xlu0 %2037 }
0x16b2   : > { %v2039_v13 = vsub.f32 %v2035_v10, %v2038_v12 }
0x16b4   : > { %v2040_v14 = vmul.f32 1.442695, %v2039_v13 }
0x16b5   : > { %v2049_v15 = vpop.permute.xlu0 %2048 }
0x16b6   : > { %3250 = vpow2.f32 %v2040_v14  ;;  %v2054_v16 = vsel %vm747_vm2, %v2049_v15, 0 }
0x16b7   : > { %3072 = vmatpush3.bf16.msra.mxu0 %v2054_v16 }
0x16b8   : > { %3083 = vmatprep.subr.bf16.mxu0 %v3328_v8 }
0x16b9   : > { %v2146_v32 = vpop.permute.xlu0 %2145 }
0x16c0   : > { %v3251_v17 = vpop.eup %3250 }
0x16c1   : > { %v2042_v18 = vsel %vm681_vm3, %v3251_v17, 0.0 }
0x16c2   : > { %2043 = vadd.xlane.f32.xlu1 %v2042_v18 }
0x16d3   : > { %2147 = vrot.lane.b32.xlu1 %v3736_v61, %s4054_s22  ;;  %s548_s22 = sand.u32 1, %s3318_s25  }
0x16d4   : > { %s2717_s30 = sshll.u32 %s548_s22, 3  ;;  %s2632_s29 = scalar_lea.sflag [#allocation3], %s548_s22 }
0x16d5   : > { %s550_s18 = scalar_lea.vmem [#allocation2], %s2717_s30  ;;  %s3268_s30 = sshll.u32 %s3342_s28, 4  ;;  %s3269_s30 = int_to_ptr.vmem [resolvable:$false] %s3268_s30 }
0x16d6   : > { %s2645_s2 = sshll.u32 %s550_s18, 4  ;;  %s3270_s3 = scalar_lea.vmem %s3269_s30, 256  ;;  %s3961_s2 = int_to_ptr.vmem [resolvable:$true] %s2645_s2 }
0x16d7   : > { %s3264_s23 = scalar_lea.vmem %s3961_s2, 128  ;;  %p3271_p0 = scmp.lt.s32.totalorder %s3961_s2, %s3269_s30 }
0x16d8   : > { %p3265_p11 = scmp.ne.s32.totalorder %s3961_s2, %s3264_s23  ;;  %p3272_p1 = scmp.lt.s32.totalorder %s3270_s3, %s3264_s23 }
0x16da   : > { %p3266_p12 = pnand %p3265_p11, %p3471_p5  ;;  %p3273_p2 = por %p3272_p1, %p3271_p0 }
0x16dc   : > { %p3267_p13 = pneg %p3266_p12 }
0x16de   : > { %p3274_p3 = pnand %p3273_p2, %p3267_p13 }
0x16ec   : > { %v1977_v21 = vpop.f32.mrb[36].mxu0 }
0x16ed   : > { %v1983_v22 = vadd.f32 %v1977_v21, %v1822_v20  ;;  %v3063_v23 = vpop.f32.mrb[37].mxu0 }
0x16ee   : > { %v1980_v24 = vpop.f32.mrb[38].mxu0  ;;  %v3210_v23 = vld [vmem:[%s4013_s12 + $0x40] sm:$0xff]  }
0x16ef   : > { %v3064_v26 = vpop.f32.mrb[39].mxu0 }
0x174f   : > { %v2044_v27 = vpop.xlane.xlu1 %2043 }
0x1750   : > { %3252 = vrcp.f32 %v2044_v27 }
0x1753   : > { %v2148_v30 = vpop.permute.xlu1 %2147 }
0x1754   : > { %v2153_v31 = vsel %vm681_vm3, %v2148_v30, 0 }
0x175a   : > { %v3253_v28 = vpop.eup %3252 }
0x175b   : > { %v2046_v29 = vmul.f32 %v3253_v28, %v3251_v17 }
0x175d   : > { %v2047_v25 = vpack.c.bf16 %v2046_v29, %v2046_v29  ;;  %v2786_v29 = vld [vmem:[%s4009_s8 + $0x1] ss:$0 sm:$0xff] }
0x175f   : > { %3074 = vmatmul.mubr.msk.bf16.vlgmr.msra.gmra.mrb[40].mxu0 %vm681_vm3, %v2047_v25  ;;  %v2787_v25 = vld [vmem:[%s4010_s9 + $0x1] ss:$0 sm:$0xff] }
0x1760   : > { %3084 = vmatpush3.bf16.xpose.msra.mxu0 %v2153_v31  ;;  %3085 = vmatprep.mubr.msk.bf16.mxu0 %vm3329_vm1, %v3328_v8 }
0x1761   : > { %3095 = vmatprep.subr.bf16.mxu0 %v3328_v8 }
0x1767   : > { %3086 = vmatmul.mubr.msk.bf16.vlgmr.msra.gmra.mrb[44].mxu0 %vm681_vm3, %v2146_v32 }
0x1768   : > { %3097 = vmatprep.mubr.msk.bf16.mxu0 %vm3329_vm1, %v3328_v8  ;;  %3096 = vmatpush3.bf16.msra.mxu0 %v2263_v56 }
0x1769   : > { %3109 = vmatprep.subr.bf16.mxu0 %v3328_v8 }
0x1832   : > { %v2090_v37 = vpop.f32.mrb[40].mxu0 }
0x1833   : > { %v2096_v38 = vpack.c.bf16 %v2090_v37, %v2090_v37  ;;  %v3075_v40 = vpop.f32.mrb[41].mxu0  ;;  %v3213_v37 = vld [vmem:[%s4013_s12 + $0x58] sm:$0xff]  }
0x1834   : > { %v2093_v41 = vpop.f32.mrb[42].mxu0  ;;  %v3215_v40 = vld [vmem:[%s4013_s12 + $0x68] sm:$0xff]  }
0x1835   : > { %v3076_v42 = vpop.f32.mrb[43].mxu0  ;;  %3080 = vmatmul.mubr.msk.bf16.vlgmr.msra.gmra.mrb[52].mxu1 %vm681_vm3, %v2096_v38  ;;  %v3214_v38 = vld [vmem:[%s4013_s12 + $0x60] sm:$0xff]   ;;  %v3216_v41 = vld [vmem:[%s4013_s12 + $0x70] sm:$0xff]  }
0x1836   : > { %3091 = vmatprep.mubr.msk.bf16.mxu1 %vm3329_vm1, %v3328_v8  ;;  %v3217_v42 = vld [vmem:[%s4013_s12 + $0x78] sm:$0xff]  }
0x183a   : > { %v2189_v43 = vpop.f32.mrb[44].mxu0 }
0x183b   : > { %v2195_v44 = vmul.f32 0.35355338, %v2189_v43  ;;  %v3087_v45 = vpop.f32.mrb[45].mxu0  ;;  %v2793_v43 = vld [vmem:[%s4012_s11 + $0x1] ss:$0 sm:$0xff] }
0x183c   : > { %v2192_v46 = vpop.f32.mrb[46].mxu0 }
0x183d   : > { %v3088_v47 = vpop.f32.mrb[47].mxu0  ;;  %v2196_v48 = vsel %vm3539_vm7, %v2195_v44, -1e+30 }
0x183e   : > { %v2197_v49 = vsel %vm681_vm3, %v2196_v48, -inf }
0x183f   : > { %2198 = vmax.xlane.f32.xlu1 %v2197_v49 }
0x18cc   : > { %v2199_v50 = vpop.xlane.xlu1 %2198 }
0x18cd   : > { %v2200_v51 = vsub.f32 %v2196_v48, %v2199_v50 }
0x18cf   : > { %v2201_v52 = vmul.f32 1.442695, %v2200_v51 }
0x18d1   : > { %3254 = vpow2.f32 %v2201_v52 }
0x18db   : > { %v3255_v53 = vpop.eup %3254 }
0x18dc   : > { %v2203_v54 = vsel %vm681_vm3, %v3255_v53, 0.0 }
0x18dd   : > { %2204 = vadd.xlane.f32.xlu0 %v2203_v54 }
0x18f3   : > { %2209 = vrot.lane.b32.xlu0 %v3736_v61, %s4055_s21  ;;  %s3959_s21 = scalar_lea.hbm %s4018_s17, %s2827_s19 }
0x1908   : > { %v2138_v57 = vpop.f32.mrb[52].mxu1 }
0x1909   : > { %v2144_v58 = vadd.f32 %v2138_v57, %v1983_v22  ;;  %v3081_v0 = vpop.f32.mrb[53].mxu1  ;;  %v3208_v22 = vld [vmem:[%s4011_s10 + $0x10] sm:$0xff]  }
0x190a   : > { %v2141_v59 = vpop.f32.mrb[54].mxu1  ;;  %v2822_v0 = vld [vmem:[%s4014_s13 + $0x1] ss:$0 sm:$0xff] }
0x190b   : > { %v3082_v60 = vpop.f32.mrb[55].mxu1 }
0x196a   : > { %v2205_v62 = vpop.xlane.xlu0 %2204 }
0x196b   : > { %3256 = vrcp.f32 %v2205_v62 }
0x196e   : > { %v2210_v63 = vpop.permute.xlu0 %2209 }
0x196f   : > { %v2215_v61 = vsel %vm747_vm2, %v2210_v63, 0 }
0x1970   : > { %3090 = vmatpush3.bf16.msra.mxu1 %v2215_v61 }
0x1971   : > { %3101 = vmatprep.subr.bf16.mxu1 %v3328_v8 }
0x1975   : > { %v3257_v1 = vpop.eup %3256 }
0x1976   : > { %v2207_v2 = vmul.f32 %v3257_v1, %v3255_v53 }
0x1978   : > { %v2208_v3 = vpack.c.bf16 %v2207_v2, %v2207_v2  ;;  %v2561_v2 = vld [vmem:[%s4017_s16] sm:$0xff] }
0x197a   : > { %3092 = vmatmul.mubr.msk.bf16.vlgmr.msra.gmra.mrb[56].mxu1 %vm681_vm3, %v2208_v3  ;;  %v2562_v3 = vld [vmem:[%s4017_s16 + $0x8] sm:$0xff] }
0x197b   : > { %3105 = vmatprep.mubr.msk.bf16.mxu1 %vm3329_vm1, %v3328_v8  ;;  %3102 = vmatpush3.bf16.msra.mxu1 %v3208_v22 }
0x197c   : > { %3103 = vmatprep.subr.bf16.mxu1 %v3328_v8 }
0x1a4d   : > { %v2251_v4 = vpop.f32.mrb[56].mxu1 }
0x1a4e   : > { %v2257_v5 = vpack.c.bf16 %v2251_v4, %v2251_v4  ;;  %v3093_v6 = vpop.f32.mrb[57].mxu1  ;;  %v2570_v4 = vpack.c.bf16 %v2562_v3, %v2561_v2 }
0x1a4f   : > { %v2254_v7 = vpop.f32.mrb[58].mxu1 }
0x1a50   : > { %v3094_v9 = vpop.f32.mrb[59].mxu1  ;;  %3098 = vmatmul.mubr.msk.bf16.vlgmr.msra.gmra.mrb[48].mxu0 %vm681_vm3, %v2257_v5  ;;  %v2578_v5 = vsel %vm576_vm0, %v2570_v4, 0 }
0x1a51   : > { %3125 = vmatprep.mubr.msk.bf16.mxu0 %vm3329_vm1, %v3328_v8  ;;  %3110 = vmatpush3.bf16.msra.mxu0 %v3210_v23 }
0x1a52   : > { %3111 = vmatprep.subr.bf16.mxu0 %v3328_v8 }
0x1a55   : > { %3112 = vmatpush3.bf16.msra.mxu0 %v3211_v34 }
0x1a56   : > { %3113 = vmatprep.subr.bf16.mxu0 %v3328_v8 }
0x1a59   : > { %3114 = vmatpush3.bf16.msra.mxu0 %v3212_v35 }
0x1a5a   : > { %3115 = vmatprep.subr.bf16.mxu0 %v3328_v8 }
0x1a5d   : > { %3116 = vmatpush3.bf16.msra.mxu0 %v3213_v37 }
0x1a5e   : > { %3117 = vmatprep.subr.bf16.mxu0 %v3328_v8 }
0x1a61   : > { %3118 = vmatpush3.bf16.msra.mxu0 %v3214_v38 }
0x1a62   : > { %3119 = vmatprep.subr.bf16.mxu0 %v3328_v8 }
0x1a65   : > { %3120 = vmatpush3.bf16.msra.mxu0 %v3215_v40 }
0x1a66   : > { %3121 = vmatprep.subr.bf16.mxu0 %v3328_v8 }
0x1a69   : > { %3122 = vmatpush3.bf16.msra.mxu0 %v3216_v41 }
0x1a6a   : > { %3123 = vmatprep.subr.bf16.mxu0 %v3328_v8 }
0x1a6d   : > { %3124 = vmatpush3.bf16.msra.mxu0 %v3217_v42 }
0x1b23   : > { %v2299_v10 = vpop.f32.mrb[48].mxu0 }
0x1b24   : > { %v2305_v11 = vadd.f32 %v2299_v10, %v2144_v58  ;;  %v3099_v12 = vpop.f32.mrb[49].mxu0 }
0x1b25   : > { %v2302_v13 = vpop.f32.mrb[50].mxu0  ;;  %v2563_v12 = vld [vmem:[%s4017_s16 + $0x10] sm:$0xff] }
0x1b26   : > { %v3853_v14 = vadd.f32 %v2305_v11, %v3710_v36  ;;  %v3100_v15 = vpop.f32.mrb[51].mxu0  ;;  %v3209_v36 = vld [vmem:[%s4011_s10 + $0x18] sm:$0xff]  }
0x1b27   : > { %3104 = vmatpush3.bf16.msra.mxu1 %v3209_v36  ;;  %v2564_v13 = vld [vmem:[%s4017_s16 + $0x18] sm:$0xff] }
0x1b28   : > { %v2311_v16 = vsel %vm576_vm0, %v3853_v14, 0.0  ;;  %3129 = vmatprep.subr.bf16.mxu1 %v3328_v8 }
0x1b29   : > { %2312 = vadd.xlane.f32.xlu1 %v2311_v16  ;;  %v2565_v16 = vld [vmem:[%s4017_s16 + $0x20] sm:$0xff] }
0x1bb6   : > { %v2313_v17 = vpop.xlane.xlu1 %2312 }
0x1bb7   : > { %v2314_v18 = vmul.f32 0.03125, %v2313_v17  ;;  %v2566_v17 = vld [vmem:[%s4017_s16 + $0x28] sm:$0xff] }
0x1bb9   : > { %v2315_v19 = vsub.f32 %v3853_v14, %v2314_v18  ;;  %v2572_v18 = vpack.c.bf16 %v2566_v17, %v2565_v16 }
0x1bbb   : > { %v2316_v20 = vmul.f32 %v2315_v19, %v2315_v19 }
0x1bbd   : > { %v2317_v21 = vsel %vm576_vm0, %v2316_v20, 0.0  ;;  %v2567_v20 = vld [vmem:[%s4017_s16 + $0x30] sm:$0xff] }
0x1bbe   : > { %2318 = vadd.xlane.f32.xlu1 %v2317_v21  ;;  %v2568_v21 = vld [vmem:[%s4017_s16 + $0x38] sm:$0xff] }
0x1bbf   : > { %v2573_v22 = vpack.c.bf16 %v2568_v21, %v2567_v20 }
0x1bc1   : > { %v2587_v36 = vsel %vm576_vm0, %v2573_v22, 0 }
0x1c4b   : > { %v2319_v24 = vpop.xlane.xlu1 %2318 }
0x1c4c   : > { %v2320_v26 = vmul.f32 0.03125, %v2319_v24 }
0x1c4e   : > { %v2321_v27 = vadd.f32 1e-05, %v2320_v26 }
0x1c50   : > { %3258 = vrsqrt.f32 %v2321_v27 }
0x1c5a   : > { %v3259_v28 = vpop.eup %3258 }
0x1c5b   : > { %v2323_v30 = vmul.f32 %v3259_v28, %v2315_v19  ;;  %v2584_v19 = vsel %vm576_vm0, %v2572_v18, 0 }
0x1c5d   : > { %v2330_v31 = vmul.f32 %v2786_v29, %v2323_v30  ;;  %v2824_v29 = vld [vmem:[%s4016_s15] ss:$0 sm:$0xff] }
0x1c5f   : > { %v2337_v32 = vadd.f32 %v2787_v25, %v2330_v31 }
0x1c61   : > { %v2343_v33 = vpack.c.bf16 %v2337_v32, %v2337_v32 }
0x1c63   : > { %3106 = vmatmul.mubr.msk.bf16.vlgmr.msra.gmra.mrb[60].mxu1 %vm576_vm0, %v2343_v33 }
0x1c64   : > { %3137 = vmatprep.mubr.msk.bf16.mxu1 %vm3329_vm1, %v3328_v8  ;;  %3130 = vmatpush3.bf16.xpose.msra.mxu1 %v2578_v5 }
0x1c65   : > { %3131 = vmatprep.subr.bf16.mxu1 %v3328_v8 }
0x1d36   : > { %v2401_v44 = vpop.f32.mrb[60].mxu1 }
0x1d37   : > { %v2402_v45 = vadd.f32 %v2793_v43, %v2401_v44  ;;  %v3107_v46 = vpop.f32.mrb[61].mxu1 }
0x1d38   : > { %v2404_v47 = vpop.f32.mrb[62].mxu1 }
0x1d39   : > { %v2408_v48 = vmul.f32 0.044715, %v2402_v45  ;;  %v3108_v49 = vpop.f32.mrb[63].mxu1  ;;  %v2407_v55 = vmul.f32 0.5, %v2402_v45 }
0x1d3b   : > { %v2409_v50 = vmul.f32 %v2408_v48, %v2402_v45 }
0x1d3d   : > { %v2410_v51 = vmul.f32 %v2409_v50, %v2402_v45 }
0x1d3f   : > { %v2411_v52 = vadd.f32 %v2410_v51, %v2402_v45 }
0x1d41   : > { %v2412_v53 = vmul.f32 0.7978846, %v2411_v52 }
0x1d43   : > { %3260 = vtanh.f32 %v2412_v53 }
0x1d4d   : > { %v3261_v54 = vpop.eup %3260 }
0x1d4e   : > { %v2414_v39 = vadd.f32 1.0, %v3261_v54 }
0x1d50   : > { %v2415_v56 = vmul.f32 %v2414_v39, %v2407_v55 }
0x1d52   : > { %v2433_v57 = vpack.c.bf16 %v2415_v56, %v2415_v56 }
0x1d54   : > { %3126 = vmatmul.mubr.bf16.vlgmr.msra.gmra.mrb[52].mxu0 %v2433_v57 }
0x1e27   : > { %v2516_v58 = vpop.f32.mrb[52].mxu0 }
0x1e28   : > { %v2522_v59 = vadd.f32 %v2516_v58, %v3853_v14  ;;  %v3127_v60 = vpop.f32.mrb[53].mxu0  ;;  %v2571_v14 = vpack.c.bf16 %v2564_v13, %v2563_v12 }
0x1e29   : > { %v2519_v62 = vpop.f32.mrb[54].mxu0 }
0x1e2a   : > { %v3128_v63 = vpop.f32.mrb[55].mxu0  ;;  %v2531_v61 = vadd.f32 %v2822_v0, %v2522_v59  ;;  %v2581_v15 = vsel %vm576_vm0, %v2571_v14, 0 }
0x1e2b   : > { %3132 = vmatpush3.bf16.xpose.msra.mxu1 %v2581_v15 }
0x1e2c   : > { %v2534_v1 = vsel %vm576_vm0, %v2531_v61, 0.0  ;;  %3133 = vmatprep.subr.bf16.mxu1 %v3328_v8 }
0x1e2d   : > { %2535 = vadd.xlane.f32.xlu1 %v2534_v1 }
0x1e33   : > { %3134 = vmatpush3.bf16.xpose.msra.mxu1 %v2584_v19 }
0x1e34   : > { %3135 = vmatprep.subr.bf16.mxu1 %v3328_v8  ;;  %v2823_v8 = vld [vmem:[%s4015_s14] ss:$0 sm:$0xff] }
0x1e3b   : > { %3136 = vmatpush3.bf16.xpose.msra.mxu1 %v2587_v36 }
0x1eba   : > { %v2536_v6 = vpop.xlane.xlu1 %2535 }
0x1ebb   : > { %v2537_v7 = vmul.f32 0.03125, %v2536_v6 }
0x1ebd   : > { %v2538_v9 = vsub.f32 %v2531_v61, %v2537_v7 }
0x1ebf   : > { %v2539_v10 = vmul.f32 %v2538_v9, %v2538_v9 }
0x1ec1   : > { %v2540_v11 = vsel %vm576_vm0, %v2539_v10, 0.0 }
0x1ec2   : > { %2541 = vadd.xlane.f32.xlu1 %v2540_v11 }
0x1f4f   : > { %v2542_v23 = vpop.xlane.xlu1 %2541 }
0x1f50   : > { %v2543_v24 = vmul.f32 0.03125, %v2542_v23 }
0x1f52   : > { %v2544_v26 = vadd.f32 1e-05, %v2543_v24 }
0x1f54   : > { %3262 = vrsqrt.f32 %v2544_v26 }
0x1f5e   : > { %v3263_v27 = vpop.eup %3262 }
0x1f5f   : > { %v2546_v28 = vmul.f32 %v3263_v27, %v2538_v9 }
0x1f61   : > { %v2553_v30 = vmul.f32 %v2823_v8, %v2546_v28 }
0x1f63   : > { %v2560_v25 = vadd.f32 %v2824_v29, %v2553_v30 }
0x1f65   : > { %v2569_v31 = vpack.c.bf16 %v2560_v25, %v2560_v25 }
0x1f67   : > { %3138 = vmatmul.mubr.msk.bf16.vlgmr.msra.gmra.mrb[64].mxu1 %vm576_vm0, %v2569_v31 }
0x203a   : > { %v2623_v32 = vpop.f32.mrb[64].mxu1 }
0x203b   : > { %2630 = vst.msk [vmem:[%s550_s18] sm:$0xff] %vm2629_vm8, %v2623_v32  ;;  %v3139_v33 = vpop.f32.mrb[65].mxu1 }
0x203c   : > { %v2626_v34 = vpop.f32.mrb[66].mxu1 }
0x203d   : > { %3277 = shalt.err (!%p3274_p3)
}
0x203e   : > { %s3278_s22 = scalar_lea.hbm %s3959_s21, 128  ;;  %s3282_s26 = scalar_lea.hbm %s4018_s17, 256 }
0x203f   : > { %p3279_p4 = scmp.ne.s32.totalorder %s3959_s21, %s3278_s22  ;;  %p3283_p9 = scmp.lt.u32.totalorder %s3959_s21, %s4018_s17 }
0x2040   : > { %p3284_p10 = scmp.lt.u32.totalorder %s3282_s26, %s3278_s22  ;;  %p3286_p12 = scmp.lt.u32.totalorder %s3278_s22, %s3959_s21 }
0x2041   : > { %p3280_p7 = pnand %p3279_p4, %p3471_p5 }
0x2042   : > { %p3285_p11 = por %p3284_p10, %p3283_p9 }
0x2043   : > { %p3281_p8 = pneg %p3280_p7 }
0x2044   : > { %p3287_p13 = por %p3286_p12, %p3285_p11 }
0x2046   : > { %p3288_p0 = pnand %p3287_p13, %p3281_p8 }
0x2048   : > { %3291 = shalt.err (!%p3288_p0)
}
0x2049   : > { %3141 = dma.vmem_to_hbm [thread:$0]  (%p3471_p5), %s3961_s2, 128, %s3959_s21, %s2632_s29   ;;  %v3140_v35 = vpop.f32.mrb[67].mxu1 }
0x204a PF: > { %p3147_p1 = scmp.ge.s32.totalorder %s3326_s27, 2  ;;  %s2657_s23 = sand.u32 1, %s3314_s24  }
0x204b   : > { %s2658_s3 = scalar_lea.sflag [#allocation3], %s2657_s23 }
0x204c   : > { %p3144_p2 = pnand %p3147_p1, %p3475_p6 }
0x204e   : > { %3309 = dma.done.wait (!%p3144_p2), %s2658_s3, 128  }
0x204f   : > { %3311 = vsyncadd (!%p3144_p2), %s2658_s3, 4294967168  ;;  %s4056_s22 = sld [smem:[#allocation5_spill]]  ;;  %s4057_s26 = sld [smem:[#allocation6_spill]] }
0x2050   : > { %p27_p3 = scmp.ge.s32.totalorder %s3458_s0, 4   ;;  %s4058_s24 = smov %s3318_s25 }
0x2051   : > { %s4060_s27 = smov %s3458_s0 }
0x2052   :  { %29 = sbr.rel (!%p27_p3) target bundleno = 8 (0x8), region = 138 }
0x2055   : > { %s4059_s25 = smov %s4056_s22 }
0x2059   :  { %2663 = vsyncpa [#allocation3], 1 }
0x205a   :  { %2665 = vsyncpa [#allocation3 + $0x1], 1 }

</bundles_post_ra>
